<compile_context>
chip_gen: v5e
topology: v5e:2x2
jax: 0.10.0
libtpu: 0.0.40
codegen_flags: <defaults>
</compile_context>

<pallas_src>
import jax
import jax.numpy as jnp
from jax import lax
from jax.experimental import pallas as pl
from jax.experimental.pallas import tpu as pltpu


# ---------------------------------------------------------------------------
# Pallas kernels
# ---------------------------------------------------------------------------
def _input_proj_kernel(x_ref, w_ref, b_ref, o_ref):
    """o = x @ W + b over one (TM, Din) row tile. Bias folded in here once."""
    o_ref[...] = (
        jnp.dot(x_ref[...], w_ref[...], preferred_element_type=jnp.float32)
        + b_ref[...]
    )


def _lstm_recurrent_kernel(gx_ref, whh_ref, out_ref, h_sc, c_sc):
    """One LSTM layer recurrence over a time chunk.

    Grid = (T // TC,), sequential ("arbitrary").
    gx_ref : (TC, B, 4H) precomputed x@W_ih^T + bias for this chunk.
    h/c persist across chunks in VMEM scratch; within a chunk they are carried
    as fori_loop values (registers), not re-read/written every step.
    """
    chunk = pl.program_id(0)

    @pl.when(chunk == 0)
    def _():
        h_sc[...] = jnp.zeros_like(h_sc)
        c_sc[...] = jnp.zeros_like(c_sc)

    H = h_sc.shape[-1]
    TC = gx_ref.shape[0]
    whh = whh_ref[...]                      # (H, 4H), grid-invariant

    def step(s, carry):
        h, c = carry
        gates = gx_ref[s] + jnp.dot(h, whh, preferred_element_type=jnp.float32)
        # TODO(synk): for production H (multiple of 128) lay gates out as
        # (B, 4, H) so each gate is a lane-dense (...,128) tile.
        i_g = jax.nn.sigmoid(gates[:, 0:H])
        f_g = jax.nn.sigmoid(gates[:, H:2 * H])
        g_g = jnp.tanh(gates[:, 2 * H:3 * H])
        o_g = jax.nn.sigmoid(gates[:, 3 * H:4 * H])
        c_new = f_g * c + i_g * g_g
        h_new = o_g * jnp.tanh(c_new)
        out_ref[s] = h_new
        return h_new, c_new

    h, c = lax.fori_loop(0, TC, step, (h_sc[...], c_sc[...]), unroll=True)
    h_sc[...] = h
    c_sc[...] = c


def _fc_sigmoid_kernel(x_ref, w_ref, b_ref, o_ref):
    """out = sigmoid(x @ W^T + b) over one row tile."""
    o_ref[...] = jax.nn.sigmoid(
        jnp.dot(x_ref[...], w_ref[...], preferred_element_type=jnp.float32)
        + b_ref[...]
    )


# ---------------------------------------------------------------------------
# Wrappers (pallas_call plumbing)
# ---------------------------------------------------------------------------
def _pick_time_chunk(T, max_chunk=32):
    tc = min(T, max_chunk)
    while T % tc != 0:
        tc -= 1
    return tc


def input_projection(x2d, wih_t, b, *, tm=None):
    """x2d: (M, Din) -> x2d @ wih_t + b, (M, 4H). One big MXU matmul (M=T*B)."""
    M, Din = x2d.shape
    H4 = wih_t.shape[-1]
    if tm is None:
        tm = M if M <= 512 else 512
    grid_m = pl.cdiv(M, tm)
    return pl.pallas_call(
        _input_proj_kernel,
        out_shape=jax.ShapeDtypeStruct((M, H4), jnp.float32),
        grid_spec=pltpu.PrefetchScalarGridSpec(
            num_scalar_prefetch=0,
            grid=(grid_m,),
            in_specs=[
                pl.BlockSpec((tm, Din), lambda i: (i, 0)),
                pl.BlockSpec((Din, H4), lambda i: (0, 0)),
                pl.BlockSpec((1, H4), lambda i: (0, 0)),
            ],
            out_specs=pl.BlockSpec((tm, H4), lambda i: (i, 0)),
        ),
        compiler_params=pltpu.CompilerParams(
            dimension_semantics=("parallel",),
        ),
    )(x2d, wih_t, b)


def lstm_recurrence(gates_x, whh_t, hidden_dim, *, tc=None):
    """gates_x: (T, B, 4H) -> hidden states (T, B, H). Sequential over time."""
    T, B, H4 = gates_x.shape
    H = hidden_dim
    if tc is None:
        tc = _pick_time_chunk(T)
    grid_t = T // tc
    return pl.pallas_call(
        _lstm_recurrent_kernel,
        out_shape=jax.ShapeDtypeStruct((T, B, H), jnp.float32),
        grid_spec=pltpu.PrefetchScalarGridSpec(
            num_scalar_prefetch=0,
            grid=(grid_t,),
            in_specs=[
                pl.BlockSpec((tc, B, H4), lambda i: (i, 0, 0)),
                # Grid-invariant weight (constant index_map -> fetched once).
                # TODO(synk): on v7x with large H, single-buffer this
                # (pipeline_mode=pl.Buffered(1)) or tile the 4H axis to fit
                # the 64 MiB VMEM budget, and raise vmem_limit_bytes.
                pl.BlockSpec((H, H4), lambda i: (0, 0)),
            ],
            out_specs=pl.BlockSpec((tc, B, H), lambda i: (i, 0, 0)),
            scratch_shapes=[
                pltpu.VMEM((B, H), jnp.float32),   # h carry across chunks
                pltpu.VMEM((B, H), jnp.float32),   # c carry across chunks
            ],
        ),
        compiler_params=pltpu.CompilerParams(
            # Time axis is a true recurrence -> must stay "arbitrary".
            dimension_semantics=("arbitrary",),
        ),
    )(gates_x, whh_t)


def fc_sigmoid(x2d, w_t, b, *, tm=None):
    """x2d: (N, H) -> sigmoid(x2d @ w_t + b), (N, O). Row-tiled."""
    N, H = x2d.shape
    O = w_t.shape[-1]
    if tm is None:
        tm = N if N <= 512 else 512
    grid_m = pl.cdiv(N, tm)
    return pl.pallas_call(
        _fc_sigmoid_kernel,
        out_shape=jax.ShapeDtypeStruct((N, O), jnp.float32),
        grid_spec=pltpu.PrefetchScalarGridSpec(
            num_scalar_prefetch=0,
            grid=(grid_m,),
            in_specs=[
                pl.BlockSpec((tm, H), lambda i: (i, 0)),
                pl.BlockSpec((H, O), lambda i: (0, 0)),
                pl.BlockSpec((1, O), lambda i: (0, 0)),
            ],
            out_specs=pl.BlockSpec((tm, O), lambda i: (i, 0)),
        ),
        compiler_params=pltpu.CompilerParams(
            dimension_semantics=("parallel",),
        ),
    )(x2d, w_t, b)


def lstm_model(x, params):
    """Matches the PyTorch LSTM module forward.

    x: (B, T, input_dim)  ->  (B, T, output_dim)
    """
    h = jnp.transpose(x, (1, 0, 2))                 # (T, B, Din) time-major
    for wih_t, whh_t, b in params["layers"]:
        T, B, Din = h.shape
        # Hoisted, bias-folded input projection for ALL timesteps at once.
        gx = input_projection(h.reshape(T * B, Din), wih_t, b).reshape(T, B, -1)
        h = lstm_recurrence(gx, whh_t, whh_t.shape[0])   # (T, B, H)
    T, B, H = h.shape
    out = fc_sigmoid(h.reshape(T * B, H), params["fc_w_t"], params["fc_b"])
    out = out.reshape(T, B, -1)
    return jnp.transpose(out, (1, 0, 2))            # back to (B, T, O)


# ---------------------------------------------------------------------------
# Deterministic parameter init (mirrors nn.LSTM / nn.Linear shapes)
# ---------------------------------------------------------------------------
def init_params(key, input_dim, hidden_dim, num_layers, output_dim):
    bound = 1.0 / jnp.sqrt(hidden_dim)
    layers = []
    for layer in range(num_layers):
        in_dim = input_dim if layer == 0 else hidden_dim
        key, k1, k2, k3, k4 = jax.random.split(key, 5)
        w_ih = jax.random.uniform(k1, (4 * hidden_dim, in_dim), jnp.float32, -bound, bound)
        w_hh = jax.random.uniform(k2, (4 * hidden_dim, hidden_dim), jnp.float32, -bound, bound)
        b_ih = jax.random.uniform(k3, (4 * hidden_dim,), jnp.float32, -bound, bound)
        b_hh = jax.random.uniform(k4, (4 * hidden_dim,), jnp.float32, -bound, bound)
        layers.append((w_ih.T, w_hh.T, (b_ih + b_hh)[None, :]))
    key, k5, k6 = jax.random.split(key, 3)
    fbound = 1.0 / jnp.sqrt(hidden_dim)
    fc_w = jax.random.uniform(k5, (output_dim, hidden_dim), jnp.float32, -fbound, fbound)
    fc_b = jax.random.uniform(k6, (output_dim,), jnp.float32, -fbound, fbound)
    return {"layers": layers, "fc_w_t": fc_w.T, "fc_b": fc_b[None, :]}


# ---------------------------------------------------------------------------
# Pure-JAX reference (for correctness check)
# ---------------------------------------------------------------------------
def lstm_ref(x, params, hidden_dim):
    H = hidden_dim

    def layer(h_in, wih_t, whh_t, b):
        B = h_in.shape[1]

        def step(carry, x_t):
            h, c = carry
            gates = x_t @ wih_t + h @ whh_t + b
            i = jax.nn.sigmoid(gates[:, :H])
            f = jax.nn.sigmoid(gates[:, H:2 * H])
            g = jnp.tanh(gates[:, 2 * H:3 * H])
            o = jax.nn.sigmoid(gates[:, 3 * H:])
            c = f * c + i * g
            h = o * jnp.tanh(c)
            return (h, c), h

        init = (jnp.zeros((B, H), jnp.float32), jnp.zeros((B, H), jnp.float32))
        _, hs = jax.lax.scan(step, init, h_in)
        return hs

    h = jnp.transpose(x, (1, 0, 2))
    for wih_t, whh_t, b in params["layers"]:
        h = layer(h, wih_t, whh_t, b)
    out = jax.nn.sigmoid(h @ params["fc_w_t"] + params["fc_b"])
    return jnp.transpose(out, (1, 0, 2))


# ---------------------------------------------------------------------------
if __name__ == "__main__":
    B, T = 2, 8
    input_dim, hidden_dim, num_layers, output_dim = 4, 32, 2, 4

    key = jax.random.PRNGKey(0)
    key, kx = jax.random.split(key)
    x = jax.random.normal(kx, (B, T, input_dim), jnp.float32)

    params = init_params(key, input_dim, hidden_dim, num_layers, output_dim)

    out = jax.jit(lstm_model)(x, params)
    out = jax.block_until_ready(out)

    ref = lstm_ref(x, params, hidden_dim)
    assert out.shape == (B, T, output_dim), out.shape
    assert jnp.allclose(out, ref, atol=1e-2, rtol=1e-2), "mismatch vs reference"

    print("KERNEL_OK")
</pallas_src>

<mosaic_0001>
module attributes {stable_mosaic.version = 11 : i64} {
  func.func @_input_proj_kernel(%arg0: i32, %arg1: memref<16x32xf32, #tpu.memory_space<vmem>>, %arg2: memref<32x128xf32, #tpu.memory_space<vmem>>, %arg3: memref<1x128xf32, #tpu.memory_space<vmem>>, %arg4: memref<16x128xf32, #tpu.memory_space<vmem>>) attributes {dimension_semantics = [#tpu.dimension_semantics<parallel>], iteration_bounds = array<i64: 1>, scalar_prefetch = 0 : i64, scratch_operands = 0 : i64, tpu.core_type = #tpu.core_type<tc>, window_params = [{transform_indices = @transform_0, window_bounds = array<i64: 16, 32>}, {pipeline_mode = #tpu.pipeline_mode<synchronous>, transform_indices = @transform_1, window_bounds = array<i64: 32, 128>}, {pipeline_mode = #tpu.pipeline_mode<synchronous>, transform_indices = @transform_2, window_bounds = array<i64: 1, 128>}, {transform_indices = @transform_3, window_bounds = array<i64: 16, 128>}]} {
    %c0 = arith.constant 0 : index
    %c0_0 = arith.constant 0 : index
    %0 = vector.load %arg1[%c0, %c0_0] : memref<16x32xf32, #tpu.memory_space<vmem>>, vector<16x32xf32>
    %c0_1 = arith.constant 0 : index
    %c0_2 = arith.constant 0 : index
    %1 = vector.load %arg2[%c0_1, %c0_2] : memref<32x128xf32, #tpu.memory_space<vmem>>, vector<32x128xf32>
    %cst = arith.constant dense<0.000000e+00> : vector<16x128xf32>
    %2 = tpu.matmul %0, %1, %cst {dimension_numbers = #tpu.dot_dimension_numbers<[1], [0], [0], [1], [0, 0, 1, 1], [], []>} : vector<16x32xf32>, vector<32x128xf32>, vector<16x128xf32> -> vector<16x128xf32>
    %c0_3 = arith.constant 0 : index
    %c0_4 = arith.constant 0 : index
    %3 = vector.load %arg3[%c0_3, %c0_4] : memref<1x128xf32, #tpu.memory_space<vmem>>, vector<1x128xf32>
    %4 = vector.broadcast %3 : vector<1x128xf32> to vector<16x128xf32>
    %5 = arith.addf %2, %4 : vector<16x128xf32>
    %c0_5 = arith.constant 0 : index
    %c0_6 = arith.constant 0 : index
    %6 = vector.load %arg4[%c0_5, %c0_6] : memref<16x128xf32, #tpu.memory_space<vmem>>, vector<16x128xf32>
    tpu.vector_store %arg4[%c0_5, %c0_6], %5 {strides = array<i32>} : memref<16x128xf32, #tpu.memory_space<vmem>>, vector<16x128xf32>,
    return
  }
  func.func @transform_0(%arg0: i32) -> (i32, i32) {
    %c0_i32 = arith.constant 0 : i32
    %c0_i32_0 = arith.constant 0 : i32
    return %arg0, %c0_i32 : i32, i32
  }
  func.func @transform_1(%arg0: i32) -> (i32, i32) {
    %c0_i32 = arith.constant 0 : i32
    %c0_i32_0 = arith.constant 0 : i32
    %c0_i32_1 = arith.constant 0 : i32
    return %c0_i32, %c0_i32_0 : i32, i32
  }
  func.func @transform_2(%arg0: i32) -> (i32, i32) {
    %c0_i32 = arith.constant 0 : i32
    %c0_i32_0 = arith.constant 0 : i32
    %c0_i32_1 = arith.constant 0 : i32
    return %c0_i32, %c0_i32_0 : i32, i32
  }
  func.func @transform_3(%arg0: i32) -> (i32, i32) {
    %c0_i32 = arith.constant 0 : i32
    %c0_i32_0 = arith.constant 0 : i32
    return %arg0, %c0_i32 : i32, i32
  }
}

module attributes {stable_mosaic.version = 11 : i64} {
  func.func @_input_proj_kernel(%arg0: i32, %arg1: memref<16x4xf32, #tpu.memory_space<vmem>>, %arg2: memref<4x128xf32, #tpu.memory_space<vmem>>, %arg3: memref<1x128xf32, #tpu.memory_space<vmem>>, %arg4: memref<16x128xf32, #tpu.memory_space<vmem>>) attributes {dimension_semantics = [#tpu.dimension_semantics<parallel>], iteration_bounds = array<i64: 1>, scalar_prefetch = 0 : i64, scratch_operands = 0 : i64, tpu.core_type = #tpu.core_type<tc>, window_params = [{transform_indices = @transform_0, window_bounds = array<i64: 16, 4>}, {pipeline_mode = #tpu.pipeline_mode<synchronous>, transform_indices = @transform_1, window_bounds = array<i64: 4, 128>}, {pipeline_mode = #tpu.pipeline_mode<synchronous>, transform_indices = @transform_2, window_bounds = array<i64: 1, 128>}, {transform_indices = @transform_3, window_bounds = array<i64: 16, 128>}]} {
    %c0 = arith.constant 0 : index
    %c0_0 = arith.constant 0 : index
    %0 = vector.load %arg1[%c0, %c0_0] : memref<16x4xf32, #tpu.memory_space<vmem>>, vector<16x4xf32>
    %c0_1 = arith.constant 0 : index
    %c0_2 = arith.constant 0 : index
    %1 = vector.load %arg2[%c0_1, %c0_2] : memref<4x128xf32, #tpu.memory_space<vmem>>, vector<4x128xf32>
    %cst = arith.constant dense<0.000000e+00> : vector<16x128xf32>
    %2 = tpu.matmul %0, %1, %cst {dimension_numbers = #tpu.dot_dimension_numbers<[1], [0], [0], [1], [0, 0, 1, 1], [], []>} : vector<16x4xf32>, vector<4x128xf32>, vector<16x128xf32> -> vector<16x128xf32>
    %c0_3 = arith.constant 0 : index
    %c0_4 = arith.constant 0 : index
    %3 = vector.load %arg3[%c0_3, %c0_4] : memref<1x128xf32, #tpu.memory_space<vmem>>, vector<1x128xf32>
    %4 = vector.broadcast %3 : vector<1x128xf32> to vector<16x128xf32>
    %5 = arith.addf %2, %4 : vector<16x128xf32>
    %c0_5 = arith.constant 0 : index
    %c0_6 = arith.constant 0 : index
    %6 = vector.load %arg4[%c0_5, %c0_6] : memref<16x128xf32, #tpu.memory_space<vmem>>, vector<16x128xf32>
    tpu.vector_store %arg4[%c0_5, %c0_6], %5 {strides = array<i32>} : memref<16x128xf32, #tpu.memory_space<vmem>>, vector<16x128xf32>,
    return
  }
  func.func @transform_0(%arg0: i32) -> (i32, i32) {
    %c0_i32 = arith.constant 0 : i32
    %c0_i32_0 = arith.constant 0 : i32
    return %arg0, %c0_i32 : i32, i32
  }
  func.func @transform_1(%arg0: i32) -> (i32, i32) {
    %c0_i32 = arith.constant 0 : i32
    %c0_i32_0 = arith.constant 0 : i32
    %c0_i32_1 = arith.constant 0 : i32
    return %c0_i32, %c0_i32_0 : i32, i32
  }
  func.func @transform_2(%arg0: i32) -> (i32, i32) {
    %c0_i32 = arith.constant 0 : i32
    %c0_i32_0 = arith.constant 0 : i32
    %c0_i32_1 = arith.constant 0 : i32
    return %c0_i32, %c0_i32_0 : i32, i32
  }
  func.func @transform_3(%arg0: i32) -> (i32, i32) {
    %c0_i32 = arith.constant 0 : i32
    %c0_i32_0 = arith.constant 0 : i32
    return %arg0, %c0_i32 : i32, i32
  }
}

module attributes {stable_mosaic.version = 11 : i64} {
  func.func @_lstm_recurrent_kernel(%arg0: i32, %arg1: memref<8x2x128xf32, #tpu.memory_space<vmem>>, %arg2: memref<32x128xf32, #tpu.memory_space<vmem>>, %arg3: memref<8x2x32xf32, #tpu.memory_space<vmem>>, %arg4: memref<2x32xf32, #tpu.memory_space<vmem>>, %arg5: memref<2x32xf32, #tpu.memory_space<vmem>>) attributes {dimension_semantics = [#tpu.dimension_semantics<arbitrary>], iteration_bounds = array<i64: 1>, scalar_prefetch = 0 : i64, scratch_operands = 2 : i64, tpu.core_type = #tpu.core_type<tc>, window_params = [{transform_indices = @transform_0, window_bounds = array<i64: 8, 2, 128>}, {pipeline_mode = #tpu.pipeline_mode<synchronous>, transform_indices = @transform_1, window_bounds = array<i64: 32, 128>}, {transform_indices = @transform_2, window_bounds = array<i64: 8, 2, 32>}]} {
    %c0_i32 = arith.constant 0 : i32
    %0 = arith.cmpi eq, %arg0, %c0_i32 : i32
    %1 = arith.extui %0 : i1 to i32
    %c0_i32_0 = arith.constant 0 : i32
    %2 = arith.cmpi ne, %1, %c0_i32_0 : i32
    scf.if %2 {
      %cst_74 = arith.constant 0.000000e+00 : f32
      %280 = vector.broadcast %cst_74 : f32 to vector<2x32xf32>
      %c0_75 = arith.constant 0 : index
      %c0_76 = arith.constant 0 : index
      %281 = vector.load %arg4[%c0_75, %c0_76] : memref<2x32xf32, #tpu.memory_space<vmem>>, vector<2x32xf32>
      tpu.vector_store %arg4[%c0_75, %c0_76], %280 {strides = array<i32>} : memref<2x32xf32, #tpu.memory_space<vmem>>, vector<2x32xf32>,
      %cst_77 = arith.constant 0.000000e+00 : f32
      %282 = vector.broadcast %cst_77 : f32 to vector<2x32xf32>
      %c0_78 = arith.constant 0 : index
      %c0_79 = arith.constant 0 : index
      %283 = vector.load %arg5[%c0_78, %c0_79] : memref<2x32xf32, #tpu.memory_space<vmem>>, vector<2x32xf32>
      tpu.vector_store %arg5[%c0_78, %c0_79], %282 {strides = array<i32>} : memref<2x32xf32, #tpu.memory_space<vmem>>, vector<2x32xf32>,
    } else {
    }
    %c0 = arith.constant 0 : index
    %c0_1 = arith.constant 0 : index
    %3 = vector.load %arg2[%c0, %c0_1] : memref<32x128xf32, #tpu.memory_space<vmem>>, vector<32x128xf32>
    %c0_2 = arith.constant 0 : index
    %c0_3 = arith.constant 0 : index
    %4 = vector.load %arg4[%c0_2, %c0_3] : memref<2x32xf32, #tpu.memory_space<vmem>>, vector<2x32xf32>
    %c0_4 = arith.constant 0 : index
    %c0_5 = arith.constant 0 : index
    %5 = vector.load %arg5[%c0_4, %c0_5] : memref<2x32xf32, #tpu.memory_space<vmem>>, vector<2x32xf32>
    %c0_i32_6 = arith.constant 0 : i32
    %6 = arith.index_cast %c0_i32_6 : i32 to index
    %c0_7 = arith.constant 0 : index
    %c0_8 = arith.constant 0 : index
    %7 = vector.load %arg1[%6, %c0_7, %c0_8] : memref<8x2x128xf32, #tpu.memory_space<vmem>>, vector<1x2x128xf32>
    %8 = vector.shape_cast %7 : vector<1x2x128xf32> to vector<2x128xf32>
    %cst = arith.constant dense<0.000000e+00> : vector<2x128xf32>
    %9 = tpu.matmul %4, %3, %cst {dimension_numbers = #tpu.dot_dimension_numbers<[1], [0], [0], [1], [0, 0, 1, 1], [], []>} : vector<2x32xf32>, vector<32x128xf32>, vector<2x128xf32> -> vector<2x128xf32>
    %10 = arith.addf %8, %9 : vector<2x128xf32>
    %11 = vector.extract_strided_slice %10 {offsets = [0, 0], sizes = [2, 32], strides = [1, 1]} : vector<2x128xf32> to vector<2x32xf32>
    %12 = arith.negf %11 : vector<2x32xf32>
    %13 = math.exp %12 : vector<2x32xf32>
    %cst_9 = arith.constant 1.000000e+00 : f32
    %14 = vector.broadcast %cst_9 : f32 to vector<2x32xf32>
    %15 = arith.addf %14, %13 : vector<2x32xf32>
    %16 = arith.divf %14, %15 : vector<2x32xf32>
    %17 = vector.extract_strided_slice %10 {offsets = [0, 32], sizes = [2, 32], strides = [1, 1]} : vector<2x128xf32> to vector<2x32xf32>
    %18 = arith.negf %17 : vector<2x32xf32>
    %19 = math.exp %18 : vector<2x32xf32>
    %cst_10 = arith.constant 1.000000e+00 : f32
    %20 = vector.broadcast %cst_10 : f32 to vector<2x32xf32>
    %21 = arith.addf %20, %19 : vector<2x32xf32>
    %22 = arith.divf %20, %21 : vector<2x32xf32>
    %23 = vector.extract_strided_slice %10 {offsets = [0, 64], sizes = [2, 32], strides = [1, 1]} : vector<2x128xf32> to vector<2x32xf32>
    %24 = math.tanh %23 : vector<2x32xf32>
    %25 = vector.extract_strided_slice %10 {offsets = [0, 96], sizes = [2, 32], strides = [1, 1]} : vector<2x128xf32> to vector<2x32xf32>
    %26 = arith.negf %25 : vector<2x32xf32>
    %27 = math.exp %26 : vector<2x32xf32>
    %cst_11 = arith.constant 1.000000e+00 : f32
    %28 = vector.broadcast %cst_11 : f32 to vector<2x32xf32>
    %29 = arith.addf %28, %27 : vector<2x32xf32>
    %30 = arith.divf %28, %29 : vector<2x32xf32>
    %31 = arith.mulf %22, %5 : vector<2x32xf32>
    %32 = arith.mulf %16, %24 : vector<2x32xf32>
    %33 = arith.addf %31, %32 : vector<2x32xf32>
    %34 = math.tanh %33 : vector<2x32xf32>
    %35 = arith.mulf %30, %34 : vector<2x32xf32>
    %36 = arith.index_cast %c0_i32_6 : i32 to index
    %c0_12 = arith.constant 0 : index
    %c0_13 = arith.constant 0 : index
    %37 = vector.load %arg3[%36, %c0_12, %c0_13] : memref<8x2x32xf32, #tpu.memory_space<vmem>>, vector<1x2x32xf32>
    %38 = vector.shape_cast %37 : vector<1x2x32xf32> to vector<2x32xf32>
    %39 = vector.shape_cast %35 : vector<2x32xf32> to vector<1x2x32xf32>
    tpu.vector_store %arg3[%36, %c0_12, %c0_13], %39 {strides = array<i32>} : memref<8x2x32xf32, #tpu.memory_space<vmem>>, vector<1x2x32xf32>,
    %c1_i32 = arith.constant 1 : i32
    %40 = arith.index_cast %c1_i32 : i32 to index
    %c0_14 = arith.constant 0 : index
    %c0_15 = arith.constant 0 : index
    %41 = vector.load %arg1[%40, %c0_14, %c0_15] : memref<8x2x128xf32, #tpu.memory_space<vmem>>, vector<1x2x128xf32>
    %42 = vector.shape_cast %41 : vector<1x2x128xf32> to vector<2x128xf32>
    %cst_16 = arith.constant dense<0.000000e+00> : vector<2x128xf32>
    %43 = tpu.matmul %35, %3, %cst_16 {dimension_numbers = #tpu.dot_dimension_numbers<[1], [0], [0], [1], [0, 0, 1, 1], [], []>} : vector<2x32xf32>, vector<32x128xf32>, vector<2x128xf32> -> vector<2x128xf32>
    %44 = arith.addf %42, %43 : vector<2x128xf32>
    %45 = vector.extract_strided_slice %44 {offsets = [0, 0], sizes = [2, 32], strides = [1, 1]} : vector<2x128xf32> to vector<2x32xf32>
    %46 = arith.negf %45 : vector<2x32xf32>
    %47 = math.exp %46 : vector<2x32xf32>
    %cst_17 = arith.constant 1.000000e+00 : f32
    %48 = vector.broadcast %cst_17 : f32 to vector<2x32xf32>
    %49 = arith.addf %48, %47 : vector<2x32xf32>
    %50 = arith.divf %48, %49 : vector<2x32xf32>
    %51 = vector.extract_strided_slice %44 {offsets = [0, 32], sizes = [2, 32], strides = [1, 1]} : vector<2x128xf32> to vector<2x32xf32>
    %52 = arith.negf %51 : vector<2x32xf32>
    %53 = math.exp %52 : vector<2x32xf32>
    %cst_18 = arith.constant 1.000000e+00 : f32
    %54 = vector.broadcast %cst_18 : f32 to vector<2x32xf32>
    %55 = arith.addf %54, %53 : vector<2x32xf32>
    %56 = arith.divf %54, %55 : vector<2x32xf32>
    %57 = vector.extract_strided_slice %44 {offsets = [0, 64], sizes = [2, 32], strides = [1, 1]} : vector<2x128xf32> to vector<2x32xf32>
    %58 = math.tanh %57 : vector<2x32xf32>
    %59 = vector.extract_strided_slice %44 {offsets = [0, 96], sizes = [2, 32], strides = [1, 1]} : vector<2x128xf32> to vector<2x32xf32>
    %60 = arith.negf %59 : vector<2x32xf32>
    %61 = math.exp %60 : vector<2x32xf32>
    %cst_19 = arith.constant 1.000000e+00 : f32
    %62 = vector.broadcast %cst_19 : f32 to vector<2x32xf32>
    %63 = arith.addf %62, %61 : vector<2x32xf32>
    %64 = arith.divf %62, %63 : vector<2x32xf32>
    %65 = arith.mulf %56, %33 : vector<2x32xf32>
    %66 = arith.mulf %50, %58 : vector<2x32xf32>
    %67 = arith.addf %65, %66 : vector<2x32xf32>
    %68 = math.tanh %67 : vector<2x32xf32>
    %69 = arith.mulf %64, %68 : vector<2x32xf32>
    %70 = arith.index_cast %c1_i32 : i32 to index
    %c0_20 = arith.constant 0 : index
    %c0_21 = arith.constant 0 : index
    %71 = vector.load %arg3[%70, %c0_20, %c0_21] : memref<8x2x32xf32, #tpu.memory_space<vmem>>, vector<1x2x32xf32>
    %72 = vector.shape_cast %71 : vector<1x2x32xf32> to vector<2x32xf32>
    %73 = vector.shape_cast %69 : vector<2x32xf32> to vector<1x2x32xf32>
    tpu.vector_store %arg3[%70, %c0_20, %c0_21], %73 {strides = array<i32>} : memref<8x2x32xf32, #tpu.memory_space<vmem>>, vector<1x2x32xf32>,
    %c2_i32 = arith.constant 2 : i32
    %74 = arith.index_cast %c2_i32 : i32 to index
    %c0_22 = arith.constant 0 : index
    %c0_23 = arith.constant 0 : index
    %75 = vector.load %arg1[%74, %c0_22, %c0_23] : memref<8x2x128xf32, #tpu.memory_space<vmem>>, vector<1x2x128xf32>
    %76 = vector.shape_cast %75 : vector<1x2x128xf32> to vector<2x128xf32>
    %cst_24 = arith.constant dense<0.000000e+00> : vector<2x128xf32>
    %77 = tpu.matmul %69, %3, %cst_24 {dimension_numbers = #tpu.dot_dimension_numbers<[1], [0], [0], [1], [0, 0, 1, 1], [], []>} : vector<2x32xf32>, vector<32x128xf32>, vector<2x128xf32> -> vector<2x128xf32>
    %78 = arith.addf %76, %77 : vector<2x128xf32>
    %79 = vector.extract_strided_slice %78 {offsets = [0, 0], sizes = [2, 32], strides = [1, 1]} : vector<2x128xf32> to vector<2x32xf32>
    %80 = arith.negf %79 : vector<2x32xf32>
    %81 = math.exp %80 : vector<2x32xf32>
    %cst_25 = arith.constant 1.000000e+00 : f32
    %82 = vector.broadcast %cst_25 : f32 to vector<2x32xf32>
    %83 = arith.addf %82, %81 : vector<2x32xf32>
    %84 = arith.divf %82, %83 : vector<2x32xf32>
    %85 = vector.extract_strided_slice %78 {offsets = [0, 32], sizes = [2, 32], strides = [1, 1]} : vector<2x128xf32> to vector<2x32xf32>
    %86 = arith.negf %85 : vector<2x32xf32>
    %87 = math.exp %86 : vector<2x32xf32>
    %cst_26 = arith.constant 1.000000e+00 : f32
    %88 = vector.broadcast %cst_26 : f32 to vector<2x32xf32>
    %89 = arith.addf %88, %87 : vector<2x32xf32>
    %90 = arith.divf %88, %89 : vector<2x32xf32>
    %91 = vector.extract_strided_slice %78 {offsets = [0, 64], sizes = [2, 32], strides = [1, 1]} : vector<2x128xf32> to vector<2x32xf32>
    %92 = math.tanh %91 : vector<2x32xf32>
    %93 = vector.extract_strided_slice %78 {offsets = [0, 96], sizes = [2, 32], strides = [1, 1]} : vector<2x128xf32> to vector<2x32xf32>
    %94 = arith.negf %93 : vector<2x32xf32>
    %95 = math.exp %94 : vector<2x32xf32>
    %cst_27 = arith.constant 1.000000e+00 : f32
    %96 = vector.broadcast %cst_27 : f32 to vector<2x32xf32>
    %97 = arith.addf %96, %95 : vector<2x32xf32>
    %98 = arith.divf %96, %97 : vector<2x32xf32>
    %99 = arith.mulf %90, %67 : vector<2x32xf32>
    %100 = arith.mulf %84, %92 : vector<2x32xf32>
    %101 = arith.addf %99, %100 : vector<2x32xf32>
    %102 = math.tanh %101 : vector<2x32xf32>
    %103 = arith.mulf %98, %102 : vector<2x32xf32>
    %104 = arith.index_cast %c2_i32 : i32 to index
    %c0_28 = arith.constant 0 : index
    %c0_29 = arith.constant 0 : index
    %105 = vector.load %arg3[%104, %c0_28, %c0_29] : memref<8x2x32xf32, #tpu.memory_space<vmem>>, vector<1x2x32xf32>
    %106 = vector.shape_cast %105 : vector<1x2x32xf32> to vector<2x32xf32>
    %107 = vector.shape_cast %103 : vector<2x32xf32> to vector<1x2x32xf32>
    tpu.vector_store %arg3[%104, %c0_28, %c0_29], %107 {strides = array<i32>} : memref<8x2x32xf32, #tpu.memory_space<vmem>>, vector<1x2x32xf32>,
    %c3_i32 = arith.constant 3 : i32
    %108 = arith.index_cast %c3_i32 : i32 to index
    %c0_30 = arith.constant 0 : index
    %c0_31 = arith.constant 0 : index
    %109 = vector.load %arg1[%108, %c0_30, %c0_31] : memref<8x2x128xf32, #tpu.memory_space<vmem>>, vector<1x2x128xf32>
    %110 = vector.shape_cast %109 : vector<1x2x128xf32> to vector<2x128xf32>
    %cst_32 = arith.constant dense<0.000000e+00> : vector<2x128xf32>
    %111 = tpu.matmul %103, %3, %cst_32 {dimension_numbers = #tpu.dot_dimension_numbers<[1], [0], [0], [1], [0, 0, 1, 1], [], []>} : vector<2x32xf32>, vector<32x128xf32>, vector<2x128xf32> -> vector<2x128xf32>
    %112 = arith.addf %110, %111 : vector<2x128xf32>
    %113 = vector.extract_strided_slice %112 {offsets = [0, 0], sizes = [2, 32], strides = [1, 1]} : vector<2x128xf32> to vector<2x32xf32>
    %114 = arith.negf %113 : vector<2x32xf32>
    %115 = math.exp %114 : vector<2x32xf32>
    %cst_33 = arith.constant 1.000000e+00 : f32
    %116 = vector.broadcast %cst_33 : f32 to vector<2x32xf32>
    %117 = arith.addf %116, %115 : vector<2x32xf32>
    %118 = arith.divf %116, %117 : vector<2x32xf32>
    %119 = vector.extract_strided_slice %112 {offsets = [0, 32], sizes = [2, 32], strides = [1, 1]} : vector<2x128xf32> to vector<2x32xf32>
    %120 = arith.negf %119 : vector<2x32xf32>
    %121 = math.exp %120 : vector<2x32xf32>
    %cst_34 = arith.constant 1.000000e+00 : f32
    %122 = vector.broadcast %cst_34 : f32 to vector<2x32xf32>
    %123 = arith.addf %122, %121 : vector<2x32xf32>
    %124 = arith.divf %122, %123 : vector<2x32xf32>
    %125 = vector.extract_strided_slice %112 {offsets = [0, 64], sizes = [2, 32], strides = [1, 1]} : vector<2x128xf32> to vector<2x32xf32>
    %126 = math.tanh %125 : vector<2x32xf32>
    %127 = vector.extract_strided_slice %112 {offsets = [0, 96], sizes = [2, 32], strides = [1, 1]} : vector<2x128xf32> to vector<2x32xf32>
    %128 = arith.negf %127 : vector<2x32xf32>
    %129 = math.exp %128 : vector<2x32xf32>
    %cst_35 = arith.constant 1.000000e+00 : f32
    %130 = vector.broadcast %cst_35 : f32 to vector<2x32xf32>
    %131 = arith.addf %130, %129 : vector<2x32xf32>
    %132 = arith.divf %130, %131 : vector<2x32xf32>
    %133 = arith.mulf %124, %101 : vector<2x32xf32>
    %134 = arith.mulf %118, %126 : vector<2x32xf32>
    %135 = arith.addf %133, %134 : vector<2x32xf32>
    %136 = math.tanh %135 : vector<2x32xf32>
    %137 = arith.mulf %132, %136 : vector<2x32xf32>
    %138 = arith.index_cast %c3_i32 : i32 to index
    %c0_36 = arith.constant 0 : index
    %c0_37 = arith.constant 0 : index
    %139 = vector.load %arg3[%138, %c0_36, %c0_37] : memref<8x2x32xf32, #tpu.memory_space<vmem>>, vector<1x2x32xf32>
    %140 = vector.shape_cast %139 : vector<1x2x32xf32> to vector<2x32xf32>
    %141 = vector.shape_cast %137 : vector<2x32xf32> to vector<1x2x32xf32>
    tpu.vector_store %arg3[%138, %c0_36, %c0_37], %141 {strides = array<i32>} : memref<8x2x32xf32, #tpu.memory_space<vmem>>, vector<1x2x32xf32>,
    %c4_i32 = arith.constant 4 : i32
    %142 = arith.index_cast %c4_i32 : i32 to index
    %c0_38 = arith.constant 0 : index
    %c0_39 = arith.constant 0 : index
    %143 = vector.load %arg1[%142, %c0_38, %c0_39] : memref<8x2x128xf32, #tpu.memory_space<vmem>>, vector<1x2x128xf32>
    %144 = vector.shape_cast %143 : vector<1x2x128xf32> to vector<2x128xf32>
    %cst_40 = arith.constant dense<0.000000e+00> : vector<2x128xf32>
    %145 = tpu.matmul %137, %3, %cst_40 {dimension_numbers = #tpu.dot_dimension_numbers<[1], [0], [0], [1], [0, 0, 1, 1], [], []>} : vector<2x32xf32>, vector<32x128xf32>, vector<2x128xf32> -> vector<2x128xf32>
    %146 = arith.addf %144, %145 : vector<2x128xf32>
    %147 = vector.extract_strided_slice %146 {offsets = [0, 0], sizes = [2, 32], strides = [1, 1]} : vector<2x128xf32> to vector<2x32xf32>
    %148 = arith.negf %147 : vector<2x32xf32>
    %149 = math.exp %148 : vector<2x32xf32>
    %cst_41 = arith.constant 1.000000e+00 : f32
    %150 = vector.broadcast %cst_41 : f32 to vector<2x32xf32>
    %151 = arith.addf %150, %149 : vector<2x32xf32>
    %152 = arith.divf %150, %151 : vector<2x32xf32>
    %153 = vector.extract_strided_slice %146 {offsets = [0, 32], sizes = [2, 32], strides = [1, 1]} : vector<2x128xf32> to vector<2x32xf32>
    %154 = arith.negf %153 : vector<2x32xf32>
    %155 = math.exp %154 : vector<2x32xf32>
    %cst_42 = arith.constant 1.000000e+00 : f32
    %156 = vector.broadcast %cst_42 : f32 to vector<2x32xf32>
    %157 = arith.addf %156, %155 : vector<2x32xf32>
    %158 = arith.divf %156, %157 : vector<2x32xf32>
    %159 = vector.extract_strided_slice %146 {offsets = [0, 64], sizes = [2, 32], strides = [1, 1]} : vector<2x128xf32> to vector<2x32xf32>
    %160 = math.tanh %159 : vector<2x32xf32>
    %161 = vector.extract_strided_slice %146 {offsets = [0, 96], sizes = [2, 32], strides = [1, 1]} : vector<2x128xf32> to vector<2x32xf32>
    %162 = arith.negf %161 : vector<2x32xf32>
    %163 = math.exp %162 : vector<2x32xf32>
    %cst_43 = arith.constant 1.000000e+00 : f32
    %164 = vector.broadcast %cst_43 : f32 to vector<2x32xf32>
    %165 = arith.addf %164, %163 : vector<2x32xf32>
    %166 = arith.divf %164, %165 : vector<2x32xf32>
    %167 = arith.mulf %158, %135 : vector<2x32xf32>
    %168 = arith.mulf %152, %160 : vector<2x32xf32>
    %169 = arith.addf %167, %168 : vector<2x32xf32>
    %170 = math.tanh %169 : vector<2x32xf32>
    %171 = arith.mulf %166, %170 : vector<2x32xf32>
    %172 = arith.index_cast %c4_i32 : i32 to index
    %c0_44 = arith.constant 0 : index
    %c0_45 = arith.constant 0 : index
    %173 = vector.load %arg3[%172, %c0_44, %c0_45] : memref<8x2x32xf32, #tpu.memory_space<vmem>>, vector<1x2x32xf32>
    %174 = vector.shape_cast %173 : vector<1x2x32xf32> to vector<2x32xf32>
    %175 = vector.shape_cast %171 : vector<2x32xf32> to vector<1x2x32xf32>
    tpu.vector_store %arg3[%172, %c0_44, %c0_45], %175 {strides = array<i32>} : memref<8x2x32xf32, #tpu.memory_space<vmem>>, vector<1x2x32xf32>,
    %c5_i32 = arith.constant 5 : i32
    %176 = arith.index_cast %c5_i32 : i32 to index
    %c0_46 = arith.constant 0 : index
    %c0_47 = arith.constant 0 : index
    %177 = vector.load %arg1[%176, %c0_46, %c0_47] : memref<8x2x128xf32, #tpu.memory_space<vmem>>, vector<1x2x128xf32>
    %178 = vector.shape_cast %177 : vector<1x2x128xf32> to vector<2x128xf32>
    %cst_48 = arith.constant dense<0.000000e+00> : vector<2x128xf32>
    %179 = tpu.matmul %171, %3, %cst_48 {dimension_numbers = #tpu.dot_dimension_numbers<[1], [0], [0], [1], [0, 0, 1, 1], [], []>} : vector<2x32xf32>, vector<32x128xf32>, vector<2x128xf32> -> vector<2x128xf32>
    %180 = arith.addf %178, %179 : vector<2x128xf32>
    %181 = vector.extract_strided_slice %180 {offsets = [0, 0], sizes = [2, 32], strides = [1, 1]} : vector<2x128xf32> to vector<2x32xf32>
    %182 = arith.negf %181 : vector<2x32xf32>
    %183 = math.exp %182 : vector<2x32xf32>
    %cst_49 = arith.constant 1.000000e+00 : f32
    %184 = vector.broadcast %cst_49 : f32 to vector<2x32xf32>
    %185 = arith.addf %184, %183 : vector<2x32xf32>
    %186 = arith.divf %184, %185 : vector<2x32xf32>
    %187 = vector.extract_strided_slice %180 {offsets = [0, 32], sizes = [2, 32], strides = [1, 1]} : vector<2x128xf32> to vector<2x32xf32>
    %188 = arith.negf %187 : vector<2x32xf32>
    %189 = math.exp %188 : vector<2x32xf32>
    %cst_50 = arith.constant 1.000000e+00 : f32
    %190 = vector.broadcast %cst_50 : f32 to vector<2x32xf32>
    %191 = arith.addf %190, %189 : vector<2x32xf32>
    %192 = arith.divf %190, %191 : vector<2x32xf32>
    %193 = vector.extract_strided_slice %180 {offsets = [0, 64], sizes = [2, 32], strides = [1, 1]} : vector<2x128xf32> to vector<2x32xf32>
    %194 = math.tanh %193 : vector<2x32xf32>
    %195 = vector.extract_strided_slice %180 {offsets = [0, 96], sizes = [2, 32], strides = [1, 1]} : vector<2x128xf32> to vector<2x32xf32>
    %196 = arith.negf %195 : vector<2x32xf32>
    %197 = math.exp %196 : vector<2x32xf32>
    %cst_51 = arith.constant 1.000000e+00 : f32
    %198 = vector.broadcast %cst_51 : f32 to vector<2x32xf32>
    %199 = arith.addf %198, %197 : vector<2x32xf32>
    %200 = arith.divf %198, %199 : vector<2x32xf32>
    %201 = arith.mulf %192, %169 : vector<2x32xf32>
    %202 = arith.mulf %186, %194 : vector<2x32xf32>
    %203 = arith.addf %201, %202 : vector<2x32xf32>
    %204 = math.tanh %203 : vector<2x32xf32>
    %205 = arith.mulf %200, %204 : vector<2x32xf32>
    %206 = arith.index_cast %c5_i32 : i32 to index
    %c0_52 = arith.constant 0 : index
    %c0_53 = arith.constant 0 : index
    %207 = vector.load %arg3[%206, %c0_52, %c0_53] : memref<8x2x32xf32, #tpu.memory_space<vmem>>, vector<1x2x32xf32>
    %208 = vector.shape_cast %207 : vector<1x2x32xf32> to vector<2x32xf32>
    %209 = vector.shape_cast %205 : vector<2x32xf32> to vector<1x2x32xf32>
    tpu.vector_store %arg3[%206, %c0_52, %c0_53], %209 {strides = array<i32>} : memref<8x2x32xf32, #tpu.memory_space<vmem>>, vector<1x2x32xf32>,
    %c6_i32 = arith.constant 6 : i32
    %210 = arith.index_cast %c6_i32 : i32 to index
    %c0_54 = arith.constant 0 : index
    %c0_55 = arith.constant 0 : index
    %211 = vector.load %arg1[%210, %c0_54, %c0_55] : memref<8x2x128xf32, #tpu.memory_space<vmem>>, vector<1x2x128xf32>
    %212 = vector.shape_cast %211 : vector<1x2x128xf32> to vector<2x128xf32>
    %cst_56 = arith.constant dense<0.000000e+00> : vector<2x128xf32>
    %213 = tpu.matmul %205, %3, %cst_56 {dimension_numbers = #tpu.dot_dimension_numbers<[1], [0], [0], [1], [0, 0, 1, 1], [], []>} : vector<2x32xf32>, vector<32x128xf32>, vector<2x128xf32> -> vector<2x128xf32>
    %214 = arith.addf %212, %213 : vector<2x128xf32>
    %215 = vector.extract_strided_slice %214 {offsets = [0, 0], sizes = [2, 32], strides = [1, 1]} : vector<2x128xf32> to vector<2x32xf32>
    %216 = arith.negf %215 : vector<2x32xf32>
    %217 = math.exp %216 : vector<2x32xf32>
    %cst_57 = arith.constant 1.000000e+00 : f32
    %218 = vector.broadcast %cst_57 : f32 to vector<2x32xf32>
    %219 = arith.addf %218, %217 : vector<2x32xf32>
    %220 = arith.divf %218, %219 : vector<2x32xf32>
    %221 = vector.extract_strided_slice %214 {offsets = [0, 32], sizes = [2, 32], strides = [1, 1]} : vector<2x128xf32> to vector<2x32xf32>
    %222 = arith.negf %221 : vector<2x32xf32>
    %223 = math.exp %222 : vector<2x32xf32>
    %cst_58 = arith.constant 1.000000e+00 : f32
    %224 = vector.broadcast %cst_58 : f32 to vector<2x32xf32>
    %225 = arith.addf %224, %223 : vector<2x32xf32>
    %226 = arith.divf %224, %225 : vector<2x32xf32>
    %227 = vector.extract_strided_slice %214 {offsets = [0, 64], sizes = [2, 32], strides = [1, 1]} : vector<2x128xf32> to vector<2x32xf32>
    %228 = math.tanh %227 : vector<2x32xf32>
    %229 = vector.extract_strided_slice %214 {offsets = [0, 96], sizes = [2, 32], strides = [1, 1]} : vector<2x128xf32> to vector<2x32xf32>
    %230 = arith.negf %229 : vector<2x32xf32>
    %231 = math.exp %230 : vector<2x32xf32>
    %cst_59 = arith.constant 1.000000e+00 : f32
    %232 = vector.broadcast %cst_59 : f32 to vector<2x32xf32>
    %233 = arith.addf %232, %231 : vector<2x32xf32>
    %234 = arith.divf %232, %233 : vector<2x32xf32>
    %235 = arith.mulf %226, %203 : vector<2x32xf32>
    %236 = arith.mulf %220, %228 : vector<2x32xf32>
    %237 = arith.addf %235, %236 : vector<2x32xf32>
    %238 = math.tanh %237 : vector<2x32xf32>
    %239 = arith.mulf %234, %238 : vector<2x32xf32>
    %240 = arith.index_cast %c6_i32 : i32 to index
    %c0_60 = arith.constant 0 : index
    %c0_61 = arith.constant 0 : index
    %241 = vector.load %arg3[%240, %c0_60, %c0_61] : memref<8x2x32xf32, #tpu.memory_space<vmem>>, vector<1x2x32xf32>
    %242 = vector.shape_cast %241 : vector<1x2x32xf32> to vector<2x32xf32>
    %243 = vector.shape_cast %239 : vector<2x32xf32> to vector<1x2x32xf32>
    tpu.vector_store %arg3[%240, %c0_60, %c0_61], %243 {strides = array<i32>} : memref<8x2x32xf32, #tpu.memory_space<vmem>>, vector<1x2x32xf32>,
    %c7_i32 = arith.constant 7 : i32
    %244 = arith.index_cast %c7_i32 : i32 to index
    %c0_62 = arith.constant 0 : index
    %c0_63 = arith.constant 0 : index
    %245 = vector.load %arg1[%244, %c0_62, %c0_63] : memref<8x2x128xf32, #tpu.memory_space<vmem>>, vector<1x2x128xf32>
    %246 = vector.shape_cast %245 : vector<1x2x128xf32> to vector<2x128xf32>
    %cst_64 = arith.constant dense<0.000000e+00> : vector<2x128xf32>
    %247 = tpu.matmul %239, %3, %cst_64 {dimension_numbers = #tpu.dot_dimension_numbers<[1], [0], [0], [1], [0, 0, 1, 1], [], []>} : vector<2x32xf32>, vector<32x128xf32>, vector<2x128xf32> -> vector<2x128xf32>
    %248 = arith.addf %246, %247 : vector<2x128xf32>
    %249 = vector.extract_strided_slice %248 {offsets = [0, 0], sizes = [2, 32], strides = [1, 1]} : vector<2x128xf32> to vector<2x32xf32>
    %250 = arith.negf %249 : vector<2x32xf32>
    %251 = math.exp %250 : vector<2x32xf32>
    %cst_65 = arith.constant 1.000000e+00 : f32
    %252 = vector.broadcast %cst_65 : f32 to vector<2x32xf32>
    %253 = arith.addf %252, %251 : vector<2x32xf32>
    %254 = arith.divf %252, %253 : vector<2x32xf32>
    %255 = vector.extract_strided_slice %248 {offsets = [0, 32], sizes = [2, 32], strides = [1, 1]} : vector<2x128xf32> to vector<2x32xf32>
    %256 = arith.negf %255 : vector<2x32xf32>
    %257 = math.exp %256 : vector<2x32xf32>
    %cst_66 = arith.constant 1.000000e+00 : f32
    %258 = vector.broadcast %cst_66 : f32 to vector<2x32xf32>
    %259 = arith.addf %258, %257 : vector<2x32xf32>
    %260 = arith.divf %258, %259 : vector<2x32xf32>
    %261 = vector.extract_strided_slice %248 {offsets = [0, 64], sizes = [2, 32], strides = [1, 1]} : vector<2x128xf32> to vector<2x32xf32>
    %262 = math.tanh %261 : vector<2x32xf32>
    %263 = vector.extract_strided_slice %248 {offsets = [0, 96], sizes = [2, 32], strides = [1, 1]} : vector<2x128xf32> to vector<2x32xf32>
    %264 = arith.negf %263 : vector<2x32xf32>
    %265 = math.exp %264 : vector<2x32xf32>
    %cst_67 = arith.constant 1.000000e+00 : f32
    %266 = vector.broadcast %cst_67 : f32 to vector<2x32xf32>
    %267 = arith.addf %266, %265 : vector<2x32xf32>
    %268 = arith.divf %266, %267 : vector<2x32xf32>
    %269 = arith.mulf %260, %237 : vector<2x32xf32>
    %270 = arith.mulf %254, %262 : vector<2x32xf32>
    %271 = arith.addf %269, %270 : vector<2x32xf32>
    %272 = math.tanh %271 : vector<2x32xf32>
    %273 = arith.mulf %268, %272 : vector<2x32xf32>
    %274 = arith.index_cast %c7_i32 : i32 to index
    %c0_68 = arith.constant 0 : index
    %c0_69 = arith.constant 0 : index
    %275 = vector.load %arg3[%274, %c0_68, %c0_69] : memref<8x2x32xf32, #tpu.memory_space<vmem>>, vector<1x2x32xf32>
    %276 = vector.shape_cast %275 : vector<1x2x32xf32> to vector<2x32xf32>
    %277 = vector.shape_cast %273 : vector<2x32xf32> to vector<1x2x32xf32>
    tpu.vector_store %arg3[%274, %c0_68, %c0_69], %277 {strides = array<i32>} : memref<8x2x32xf32, #tpu.memory_space<vmem>>, vector<1x2x32xf32>,
    %c8_i32 = arith.constant 8 : i32
    %c0_70 = arith.constant 0 : index
    %c0_71 = arith.constant 0 : index
    %278 = vector.load %arg4[%c0_70, %c0_71] : memref<2x32xf32, #tpu.memory_space<vmem>>, vector<2x32xf32>
    tpu.vector_store %arg4[%c0_70, %c0_71], %273 {strides = array<i32>} : memref<2x32xf32, #tpu.memory_space<vmem>>, vector<2x32xf32>,
    %c0_72 = arith.constant 0 : index
    %c0_73 = arith.constant 0 : index
    %279 = vector.load %arg5[%c0_72, %c0_73] : memref<2x32xf32, #tpu.memory_space<vmem>>, vector<2x32xf32>
    tpu.vector_store %arg5[%c0_72, %c0_73], %271 {strides = array<i32>} : memref<2x32xf32, #tpu.memory_space<vmem>>, vector<2x32xf32>,
    return
  }
  func.func @transform_0(%arg0: i32) -> (i32, i32, i32) {
    %c0_i32 = arith.constant 0 : i32
    %c0_i32_0 = arith.constant 0 : i32
    %c0_i32_1 = arith.constant 0 : i32
    return %arg0, %c0_i32, %c0_i32_0 : i32, i32, i32
  }
  func.func @transform_1(%arg0: i32) -> (i32, i32) {
    %c0_i32 = arith.constant 0 : i32
    %c0_i32_0 = arith.constant 0 : i32
    %c0_i32_1 = arith.constant 0 : i32
    return %c0_i32, %c0_i32_0 : i32, i32
  }
  func.func @transform_2(%arg0: i32) -> (i32, i32, i32) {
    %c0_i32 = arith.constant 0 : i32
    %c0_i32_0 = arith.constant 0 : i32
    %c0_i32_1 = arith.constant 0 : i32
    return %arg0, %c0_i32, %c0_i32_0 : i32, i32, i32
  }
}

module attributes {stable_mosaic.version = 11 : i64} {
  func.func @_fc_sigmoid_kernel(%arg0: i32, %arg1: memref<16x32xf32, #tpu.memory_space<vmem>>, %arg2: memref<32x4xf32, #tpu.memory_space<vmem>>, %arg3: memref<1x4xf32, #tpu.memory_space<vmem>>, %arg4: memref<16x4xf32, #tpu.memory_space<vmem>>) attributes {dimension_semantics = [#tpu.dimension_semantics<parallel>], iteration_bounds = array<i64: 1>, scalar_prefetch = 0 : i64, scratch_operands = 0 : i64, tpu.core_type = #tpu.core_type<tc>, window_params = [{transform_indices = @transform_0, window_bounds = array<i64: 16, 32>}, {pipeline_mode = #tpu.pipeline_mode<synchronous>, transform_indices = @transform_1, window_bounds = array<i64: 32, 4>}, {pipeline_mode = #tpu.pipeline_mode<synchronous>, transform_indices = @transform_2, window_bounds = array<i64: 1, 4>}, {transform_indices = @transform_3, window_bounds = array<i64: 16, 4>}]} {
    %c0 = arith.constant 0 : index
    %c0_0 = arith.constant 0 : index
    %0 = vector.load %arg1[%c0, %c0_0] : memref<16x32xf32, #tpu.memory_space<vmem>>, vector<16x32xf32>
    %c0_1 = arith.constant 0 : index
    %c0_2 = arith.constant 0 : index
    %1 = vector.load %arg2[%c0_1, %c0_2] : memref<32x4xf32, #tpu.memory_space<vmem>>, vector<32x4xf32>
    %cst = arith.constant dense<0.000000e+00> : vector<16x4xf32>
    %2 = tpu.matmul %0, %1, %cst {dimension_numbers = #tpu.dot_dimension_numbers<[1], [0], [0], [1], [0, 0, 1, 1], [], []>} : vector<16x32xf32>, vector<32x4xf32>, vector<16x4xf32> -> vector<16x4xf32>
    %c0_3 = arith.constant 0 : index
    %c0_4 = arith.constant 0 : index
    %3 = vector.load %arg3[%c0_3, %c0_4] : memref<1x4xf32, #tpu.memory_space<vmem>>, vector<1x4xf32>
    %4 = vector.broadcast %3 : vector<1x4xf32> to vector<16x4xf32>
    %5 = arith.addf %2, %4 : vector<16x4xf32>
    %6 = arith.negf %5 : vector<16x4xf32>
    %7 = math.exp %6 : vector<16x4xf32>
    %cst_5 = arith.constant 1.000000e+00 : f32
    %8 = vector.broadcast %cst_5 : f32 to vector<16x4xf32>
    %9 = arith.addf %8, %7 : vector<16x4xf32>
    %10 = arith.divf %8, %9 : vector<16x4xf32>
    %c0_6 = arith.constant 0 : index
    %c0_7 = arith.constant 0 : index
    %11 = vector.load %arg4[%c0_6, %c0_7] : memref<16x4xf32, #tpu.memory_space<vmem>>, vector<16x4xf32>
    tpu.vector_store %arg4[%c0_6, %c0_7], %10 {strides = array<i32>} : memref<16x4xf32, #tpu.memory_space<vmem>>, vector<16x4xf32>,
    return
  }
  func.func @transform_0(%arg0: i32) -> (i32, i32) {
    %c0_i32 = arith.constant 0 : i32
    %c0_i32_0 = arith.constant 0 : i32
    return %arg0, %c0_i32 : i32, i32
  }
  func.func @transform_1(%arg0: i32) -> (i32, i32) {
    %c0_i32 = arith.constant 0 : i32
    %c0_i32_0 = arith.constant 0 : i32
    %c0_i32_1 = arith.constant 0 : i32
    return %c0_i32, %c0_i32_0 : i32, i32
  }
  func.func @transform_2(%arg0: i32) -> (i32, i32) {
    %c0_i32 = arith.constant 0 : i32
    %c0_i32_0 = arith.constant 0 : i32
    %c0_i32_1 = arith.constant 0 : i32
    return %c0_i32, %c0_i32_0 : i32, i32
  }
  func.func @transform_3(%arg0: i32) -> (i32, i32) {
    %c0_i32 = arith.constant 0 : i32
    %c0_i32_0 = arith.constant 0 : i32
    return %arg0, %c0_i32 : i32, i32
  }
}

</mosaic_0001>

<bundles_post_ra>
// kernel: lstm_model.7
= control target key start
LH: loop header
LB: loop body
LE: loop exit
PB: predicated region body
PF: predicated region fallthrough
CT: control target
= control target key end

     0   :  { %vm24_vm0 = vcmask 261120   ;;  %s114_s1 = inlined_call_operand.vmem [shape: f32[32,128], index: 1, kind: input, shape index: {}]   ;;  %s115_s2 = inlined_call_operand.vmem [shape: f32[1,128], index: 2, kind: input, shape index: {}]   ;;  %s116_s0 = inlined_call_operand.vmem [shape: f32[16,32], index: 0, kind: input, shape index: {}]   ;;  %s117_s3 = inlined_call_operand.vmem [shape: f32[16,128], index: 3, kind: output, shape index: {}]  }
   0x1   :  { %v19_v0 = vld [vmem:[%s114_s1 + $0x18] sm:$0xff]  ;;  %v18_v1 = vld [vmem:[%s114_s1 + $0x10] sm:$0xff]  ;;  %v17_v2 = vld [vmem:[%s114_s1 + $0x8] sm:$0xff] }
   0x2   :  { %43 = vmatpush.msra.mxu0 %v19_v0  ;;  %62 = vmatpush.msra.mxu1 %v19_v0  ;;  %v16_v3 = vld [vmem:[%s114_s1] sm:$0xff]  ;;  %v15_v5 = vld [vmem:[%s116_s0 + $0x8] sm:$0xff] }
   0x3   :  { %v14_v4 = vld [vmem:[%s116_s0] sm:$0xff] }
   0x4   :  { %44 = vmatpush.msra.mxu0 %v18_v1  ;;  %63 = vmatpush.msra.mxu1 %v18_v1  ;;  %v66_v6 = vld [vmem:[%s115_s2] ss:$0 sm:$0xff] }
   0x6   :  { %45 = vmatpush.msra.mxu0 %v17_v2  ;;  %64 = vmatpush.msra.mxu1 %v17_v2 }
   0x8   :  { %46 = vmatpush.msra.mxu0 %v16_v3  ;;  %65 = vmatpush.msra.mxu1 %v16_v3 }
   0x9   :  { %60 = vmatmul.msk.f32.vlgmr.msra.gmra.mxu0 %vm24_vm0, %v14_v4  ;;  %61 = vmatmul.msk.f32.vlgmr.msra.gmra.mxu1 %vm24_vm0, %v15_v5 }
  0x86   :  { %v48_v7 = vpop.f32.mrf.mxu0  ;;  %v51_v8 = vpop.f32.mrf.mxu1 }
  0x87   :  { %v49_v9 = vadd.f32 %v66_v6, %v48_v7  ;;  %v52_v10 = vadd.f32 %v66_v6, %v51_v8 }
  0x89   :  { %54 = vst [vmem:[%s117_s3] sm:$0xff] %v49_v9 }
  0x8a   :  { %55 = vst [vmem:[%s117_s3 + $0x8] sm:$0xff] %v52_v10 }

// kernel: lstm_model.5
= control target key start
LH: loop header
LB: loop body
LE: loop exit
PB: predicated region body
PF: predicated region fallthrough
CT: control target
= control target key end

     0   :  { %8 = vsyncpa [#allocation3], 0  ;;  %s190_s0 = inlined_call_operand.vmem [shape: f32[16,4], index: 0, kind: input, shape index: {}]   ;;  %s191_s1 = inlined_call_operand.hbm [shape: f32[4,128], index: 1, kind: input, shape index: {}]   ;;  %s192_s2 = inlined_call_operand.hbm [shape: f32[1,128], index: 2, kind: input, shape index: {}]   ;;  %s193_s3 = inlined_call_operand.vmem [shape: f32[16,128], index: 3, kind: output, shape index: {}]  }
   0x1   :  { %s17_s14 = sshll.u32 %s191_s1, 4  ;;  %s18_s14 = int_to_ptr.hbm [resolvable:$true] %s17_s14 }
   0x2   :  { %9 = vsyncpa [#allocation5], 0  ;;  %s150_s15 = smov [#allocation2]   ;;  %s28_s19 = sshll.u32 %s192_s2, 4  ;;  %s29_s19 = int_to_ptr.hbm [resolvable:$true] %s28_s19 }
   0x3   :  { %s19_s16 = sshll.u32 %s150_s15, 4  ;;  %s151_s20 = smov [#allocation4]   ;;  %s20_s16 = int_to_ptr.vmem [resolvable:$true] %s19_s16 }
   0x4   :  { %22 = dma.hbm_to_vmem [thread:$0]  %s18_s14, 64, %s20_s16, [#allocation3]  }
   0x5   :  { %s30_s21 = sshll.u32 %s151_s20, 4  ;;  %s31_s21 = int_to_ptr.vmem [resolvable:$true] %s30_s21 }
   0x6   :  { %33 = dma.hbm_to_vmem [thread:$0]  %s29_s19, 16, %s31_s21, [#allocation5]  }
   0x7   :  { %146 = dma.done.wait [#allocation3], 64  }
   0x8   :  { %147 = vsyncadd [#allocation3], 4294967232 }
   0x9   :  { %148 = dma.done.wait [#allocation5], 16  }
   0xa   :  { %149 = vsyncadd [#allocation5], 4294967280  ;;  %vm56_vm0 = vcmask 1043456   ;;  %vm49_vm1 = vcmask 31744   ;;  %v44_v0 = vld [vmem:[#allocation2] sm:$0xf] }
   0xb   :  { %v42_v1 = vld [vmem:[%s190_s0] sm:$0xff]  ;;  %v43_v2 = vld [vmem:[%s190_s0 + $0x8] sm:$0xff]  ;;  %91 = vmatpush.msk.msra.mxu0 %vm56_vm0, %v44_v0  ;;  %94 = vmatpush.msk.msra.mxu1 %vm56_vm0, %v44_v0 }
   0xc   :  { %92 = vmatmul.msk.f32.vlgmr.msra.gmra.mxu0 %vm49_vm1, %v42_v1  ;;  %93 = vmatmul.msk.f32.vlgmr.msra.gmra.mxu1 %vm49_vm1, %v43_v2  ;;  %v97_v3 = vld [vmem:[#allocation4] ss:$0 sm:$0xff] }
  0x89   :  { %v77_v4 = vpop.f32.mrf.mxu0  ;;  %v80_v5 = vpop.f32.mrf.mxu1 }
  0x8a   :  { %v78_v6 = vadd.f32 %v97_v3, %v77_v4  ;;  %v81_v7 = vadd.f32 %v97_v3, %v80_v5 }
  0x8c   :  { %83 = vst [vmem:[%s193_s3] sm:$0xff] %v78_v6 }
  0x8d   :  { %84 = vst [vmem:[%s193_s3 + $0x8] sm:$0xff] %v81_v7 }
  0x8e   :  { %89 = vsyncpa [#allocation3], 1 }
  0x8f   :  { %90 = vsyncpa [#allocation5], 1 }

// kernel: lstm_model.9
= control target key start
LH: loop header
LB: loop body
LE: loop exit
PB: predicated region body
PF: predicated region fallthrough
CT: control target
= control target key end

     0   :  { %vm24_vm0 = vcmask 261120   ;;  %vm92_vm5 = vcmask 31744   ;;  %s163_s1 = inlined_call_operand.vmem [shape: f32[32,4], index: 1, kind: input, shape index: {}]   ;;  %s164_s2 = inlined_call_operand.vmem [shape: f32[1,4], index: 2, kind: input, shape index: {}]   ;;  %s165_s0 = inlined_call_operand.vmem [shape: f32[16,32], index: 0, kind: input, shape index: {}]   ;;  %s166_s3 = inlined_call_operand.vmem [shape: f32[16,4], index: 3, kind: output, shape index: {}]  }
   0x1   :  { %v19_v0 = vld [vmem:[%s163_s1 + $0x18] sm:$0xff]  ;;  %v18_v1 = vld [vmem:[%s163_s1 + $0x10] sm:$0xff]  ;;  %v17_v2 = vld [vmem:[%s163_s1 + $0x8] sm:$0xff] }
   0x2   :  { %43 = vmatpush.msra.mxu0 %v19_v0  ;;  %103 = vmatpush.msra.mxu1 %v19_v0  ;;  %v16_v3 = vld [vmem:[%s163_s1] sm:$0xff]  ;;  %v15_v5 = vld [vmem:[%s165_s0 + $0x8] sm:$0xff] }
   0x3   :  { %v14_v4 = vld [vmem:[%s165_s0] sm:$0xff] }
   0x4   :  { %44 = vmatpush.msra.mxu0 %v18_v1  ;;  %104 = vmatpush.msra.mxu1 %v18_v1  ;;  %v107_v6 = vld [vmem:[%s164_s2] ss:$0 sm:$0xff] }
   0x6   :  { %45 = vmatpush.msra.mxu0 %v17_v2  ;;  %105 = vmatpush.msra.mxu1 %v17_v2 }
   0x8   :  { %46 = vmatpush.msra.mxu0 %v16_v3  ;;  %106 = vmatpush.msra.mxu1 %v16_v3 }
   0x9   :  { %99 = vmatmul.msk.f32.vlgmr.msra.gmra.mxu0 %vm24_vm0, %v14_v4  ;;  %100 = vmatmul.msk.f32.vlgmr.msra.gmra.mxu1 %vm24_vm0, %v15_v5 }
  0x86   :  { %v48_v7 = vpop.f32.mrf.mxu0  ;;  %v51_v8 = vpop.f32.mrf.mxu1 }
  0x87   :  { %v49_v9 = vadd.f32 %v107_v6, %v48_v7  ;;  %v52_v10 = vadd.f32 %v107_v6, %v51_v8 }
  0x89   :  { %v101_v11 = vmul.f32 -1.442695, %v49_v9  ;;  %v102_v12 = vmul.f32 -1.442695, %v52_v10 }
  0x8b   :  { %108 = vpow2.f32 %v101_v11 }
  0x8c   :  { %110 = vpow2.f32 %v102_v12 }
  0x91   :  { %v109_v13 = vpop.eup %108 }
  0x92   :  { %v111_v14 = vpop.eup %110  ;;  %v60_v15 = vadd.f32 1.0, %v109_v13 }
  0x93   :  { %v61_v16 = vadd.f32 1.0, %v111_v14 }
  0x94   :  { %112 = vrcp.f32 %v60_v15  ;;  %v73_v22 = vand.u32 2147483648, %v60_v15  ;;  %v71_v25 = vand.u32 2147483647, %v60_v15  ;;  %vm67_vm3 = vweird.f32 %v60_v15 }
  0x95   :  { %114 = vrcp.f32 %v61_v16  ;;  %v88_v26 = vand.u32 2147483648, %v61_v16  ;;  %v86_v28 = vand.u32 2147483647, %v61_v16  ;;  %vm82_vm6 = vweird.f32 %v61_v16 }
  0x96   :  { %v74_v30 = vor.u32 1.1754944e-38, %v73_v22  ;;  %vm72_vm7 = vcmp.eq.f32.partialorder %v71_v25, 8.507059e+37 }
  0x97   :  { %v89_v33 = vor.u32 1.1754944e-38, %v88_v26  ;;  %vm87_vm9 = vcmp.eq.f32.partialorder %v86_v28, 8.507059e+37 }
  0x9a   :  { %v113_v17 = vpop.eup %112 }
  0x9b   :  { %v115_v18 = vpop.eup %114  ;;  %v63_v19 = vmul.f32 %v113_v17, %v60_v15  ;;  %vm68_vm1 = vweird.f32 %v113_v17 }
  0x9c   :  { %v78_v20 = vmul.f32 %v115_v18, %v61_v16  ;;  %vm83_vm2 = vweird.f32 %v115_v18  ;;  %vm69_vm4 = vmor %vm67_vm3, %vm68_vm1 }
  0x9d   :  { %v64_v21 = vsub.f32 1.0, %v63_v19  ;;  %vm84_vm8 = vmor %vm82_vm6, %vm83_vm2 }
  0x9e   :  { %v79_v23 = vsub.f32 1.0, %v78_v20 }
  0x9f   :  { %v65_v24 = vmul.f32 %v113_v17, %v64_v21 }
  0xa0   :  { %v80_v27 = vmul.f32 %v115_v18, %v79_v23 }
  0xa1   :  { %v66_v29 = vadd.f32 %v113_v17, %v65_v24 }
  0xa2   :  { %v81_v31 = vadd.f32 %v115_v18, %v80_v27 }
  0xa3   :  { %v70_v32 = vsel %vm69_vm4, %v113_v17, %v66_v29 }
  0xa4   :  { %v75_v34 = vsel %vm72_vm7, %v74_v30, %v70_v32  ;;  %v85_v35 = vsel %vm84_vm8, %v115_v18, %v81_v31 }
  0xa5   :  { %93 = vst.msk [vmem:[%s166_s3] sm:$0xff] %vm92_vm5, %v75_v34  ;;  %v90_v36 = vsel %vm87_vm9, %v89_v33, %v85_v35 }
  0xa6   :  { %94 = vst.msk [vmem:[%s166_s3 + $0x8] sm:$0xff] %vm92_vm5, %v90_v36 }

// kernel: lstm_model.6
= control target key start
LH: loop header
LB: loop body
LE: loop exit
PB: predicated region body
PF: predicated region fallthrough
CT: control target
= control target key end

     0   :  { %7 = vsyncpa [#allocation5], 0  ;;  %s727_s12 = smov [#allocation4]   ;;  %s728_s14 = smov 128   ;;  %s853_s0 = inlined_call_operand.vmem [shape: f32[8,2,128], index: 0, kind: input, shape index: {}]   ;;  %s854_s1 = inlined_call_operand.hbm [shape: f32[32,128], index: 1, kind: input, shape index: {}]   ;;  %s855_s2 = inlined_call_operand.vmem [shape: f32[8,2,32], index: 2, kind: output, shape index: {}]  }
   0x1   :  { %s14_s11 = sshll.u32 %s854_s1, 4  ;;  %s16_s13 = sshll.u32 %s727_s12, 4  ;;  %s15_s11 = int_to_ptr.hbm [resolvable:$true] %s14_s11  ;;  %s17_s13 = int_to_ptr.vmem [resolvable:$true] %s16_s13 }
   0x2   :  { %s729_s15 = smov 8  }
   0x3   :  { %22 = dma.hbm_to_vmem [thread:$0]  %s15_s11, 512, %s17_s13, [#allocation5], %s728_s14, %s728_s14, %s729_s15  }
   0x4   :  { %725 = dma.done.wait [#allocation5], 512  }
   0x5   :  { %726 = vsyncadd [#allocation5], 4294966784  ;;  %vm31_vm0 = vcmask 254976   ;;  %v730_v0 = vmov 0.0   ;;  %v37_v1 = vld [vmem:[#allocation4 + $0x18] sm:$0xff]  ;;  %v36_v2 = vld [vmem:[#allocation4 + $0x10] sm:$0xff] }
   0x6   :  { %32 = vst.msk [vmem:[#allocation2] sm:$0x3] %vm31_vm0, %v730_v0  ;;  %57 = vmatpush.msra.mxu0 %v37_v1  ;;  %129 = vmatpush.msra.mxu1 %v37_v1  ;;  %v35_v3 = vld [vmem:[#allocation4 + $0x8] sm:$0xff]  ;;  %v34_v4 = vld [vmem:[#allocation4] sm:$0xff]  ;;  %vm41_vm1 = vcmask 261120   ;;  %s731_s17 = smov 64  }
   0x7   :  { %33 = vst.msk [vmem:[#allocation3] sm:$0x3] %vm31_vm0, %v730_v0  ;;  %197 = vmatpush.msra.mxu2 %v37_v1  ;;  %265 = vmatpush.msra.mxu3 %v37_v1  ;;  %v40_v6 = vld [vmem:[%s853_s0] sm:$0x3]  ;;  %s732_s18 = smov 32  }
   0x8   :  { %58 = vmatpush.msra.mxu0 %v36_v2  ;;  %130 = vmatpush.msra.mxu1 %v36_v2  ;;  %v602_v34 = vld [vmem:[%s853_s0 + $0x2] sm:$0x3]  ;;  %v606_v60 = vld [vmem:[%s853_s0 + $0x4] sm:$0x3] }
   0x9   :  { %198 = vmatpush.msra.mxu2 %v36_v2  ;;  %266 = vmatpush.msra.mxu3 %v36_v2 }
   0xa   :  { %59 = vmatpush.msra.mxu0 %v35_v3  ;;  %131 = vmatpush.msra.mxu1 %v35_v3 }
   0xb   :  { %199 = vmatpush.msra.mxu2 %v35_v3  ;;  %267 = vmatpush.msra.mxu3 %v35_v3 }
   0xc   :  { %60 = vmatpush.msra.mxu0 %v34_v4  ;;  %132 = vmatpush.msra.mxu1 %v34_v4 }
   0xd   :  { %v38_v5 = vld [vmem:[#allocation2] sm:$0x3]  ;;  %200 = vmatpush.msra.mxu2 %v34_v4  ;;  %268 = vmatpush.msra.mxu3 %v34_v4 }
   0xe   :  { %600 = vmatmul.msk.f32.vlgmr.msra.gmra.mxu0 %vm41_vm1, %v38_v5  ;;  %401 = vmatpush.msrb.mxu1 %v37_v1  ;;  %v39_v10 = vld [vmem:[#allocation3] sm:$0x3] }
   0xf   :  { %333 = vmatpush.msrb.mxu0 %v37_v1  ;;  %469 = vmatpush.msrb.mxu2 %v37_v1 }
  0x10   :  { %537 = vmatpush.msrb.mxu3 %v37_v1  ;;  %402 = vmatpush.msrb.mxu1 %v36_v2 }
  0x11   :  { %334 = vmatpush.msrb.mxu0 %v36_v2  ;;  %470 = vmatpush.msrb.mxu2 %v36_v2 }
  0x12   :  { %538 = vmatpush.msrb.mxu3 %v36_v2  ;;  %403 = vmatpush.msrb.mxu1 %v35_v3 }
  0x13   :  { %335 = vmatpush.msrb.mxu0 %v35_v3  ;;  %471 = vmatpush.msrb.mxu2 %v35_v3 }
  0x14   :  { %539 = vmatpush.msrb.mxu3 %v35_v3  ;;  %404 = vmatpush.msrb.mxu1 %v34_v4 }
  0x15   :  { %336 = vmatpush.msrb.mxu0 %v34_v4  ;;  %472 = vmatpush.msrb.mxu2 %v34_v4 }
  0x16   :  { %540 = vmatpush.msrb.mxu3 %v34_v4 }
  0x8b   :  { %v62_v7 = vpop.f32.mrf.mxu0 }
  0x8c   :  { %v65_v8 = vadd.f32 %v62_v7, %v40_v6 }
  0x8e   :  { %637 = vtanh.f32 %v65_v8  ;;  %v601_v11 = vmul.f32 -1.442695, %v65_v8 }
  0x90   :  { %639 = vpow2.f32 %v601_v11 }
  0x94   :  { %v638_v9 = vpop.eup %637 }
  0x95   :  { %92 = vrot.lane.b32.xlu0 %v638_v9, %s731_s17 }
  0x96   :  { %v640_v12 = vpop.eup %639 }
  0x97   :  { %v69_v13 = vadd.f32 1.0, %v640_v12 }
  0x99   :  { %641 = vrcp.f32 %v69_v13  ;;  %v81_v19 = vand.u32 2147483648, %v69_v13  ;;  %vm75_vm3 = vweird.f32 %v69_v13  ;;  %v79_v20 = vand.u32 2147483647, %v69_v13 }
  0x9b   :  { %v82_v22 = vor.u32 1.1754944e-38, %v81_v19  ;;  %vm80_vm5 = vcmp.eq.f32.partialorder %v79_v20, 8.507059e+37 }
  0x9d   :  { %87 = vrot.lane.b32.xlu0 %v39_v10, %s732_s18 }
  0x9f   :  { %v642_v14 = vpop.eup %641 }
  0xa0   :  { %v71_v15 = vmul.f32 %v642_v14, %v69_v13  ;;  %vm76_vm2 = vweird.f32 %v642_v14 }
  0xa1   :  { %vm77_vm4 = vmor %vm75_vm3, %vm76_vm2 }
  0xa2   :  { %v72_v16 = vsub.f32 1.0, %v71_v15 }
  0xa4   :  { %v73_v17 = vmul.f32 %v642_v14, %v72_v16 }
  0xa6   :  { %v74_v18 = vadd.f32 %v642_v14, %v73_v17 }
  0xa8   :  { %v78_v21 = vsel %vm77_vm4, %v642_v14, %v74_v18 }
  0xa9   :  { %v83_v24 = vsel %vm80_vm5, %v82_v22, %v78_v21  ;;  %v610_v22 = vld [vmem:[%s853_s0 + $0x6] sm:$0x3] }
 0x107   :  { %v93_v23 = vpop.permute.xlu0 %92 }
 0x108   :  { %v95_v25 = vmul.f32 %v93_v23, %v83_v24 }
 0x10a   :  { %97 = vrot.lane.b32.xlu1 %v95_v25, %s732_s18 }
 0x10f   :  { %v88_v26 = vpop.permute.xlu0 %87 }
 0x110   :  { %v90_v27 = vmul.f32 %v88_v26, %v83_v24 }
 0x17c   :  { %v98_v28 = vpop.permute.xlu1 %97 }
 0x17d   :  { %v100_v29 = vadd.f32 %v98_v28, %v90_v27 }
 0x17f   :  { %643 = vtanh.f32 %v100_v29 }
 0x185   :  { %v644_v30 = vpop.eup %643 }
 0x186   :  { %103 = vrot.lane.b32.xlu1 %v644_v30, %s731_s17 }
 0x1f8   :  { %v104_v31 = vpop.permute.xlu1 %103 }
 0x1f9   :  { %v106_v32 = vmul.f32 %v104_v31, %v83_v24 }
 0x1fb   :  { %108 = vrot.lane.b32.xlu2 %v106_v32, %s732_s18 }
 0x255   :  { %v109_v33 = vpop.permute.xlu2 %108 }
 0x256   :  { %112 = vst.msk [vmem:[%s855_s2] sm:$0x3] %vm31_vm0, %v109_v33  ;;  %603 = vmatmul.msk.f32.vlgmr.msra.gmra.mxu1 %vm41_vm1, %v109_v33 }
 0x2d3   :  { %v134_v35 = vpop.f32.mrf.mxu1 }
 0x2d4   :  { %v137_v36 = vadd.f32 %v602_v34, %v134_v35 }
 0x2d6   :  { %645 = vtanh.f32 %v137_v36  ;;  %v604_v38 = vmul.f32 -1.442695, %v137_v36 }
 0x2d8   :  { %647 = vpow2.f32 %v604_v38 }
 0x2dc   :  { %v646_v37 = vpop.eup %645 }
 0x2dd   :  { %160 = vrot.lane.b32.xlu2 %v646_v37, %s731_s17 }
 0x2de   :  { %v648_v39 = vpop.eup %647 }
 0x2df   :  { %v141_v40 = vadd.f32 1.0, %v648_v39 }
 0x2e1   :  { %649 = vrcp.f32 %v141_v40  ;;  %v153_v46 = vand.u32 2147483648, %v141_v40  ;;  %vm147_vm7 = vweird.f32 %v141_v40  ;;  %v151_v47 = vand.u32 2147483647, %v141_v40 }
 0x2e3   :  { %v154_v49 = vor.u32 1.1754944e-38, %v153_v46  ;;  %vm152_vm9 = vcmp.eq.f32.partialorder %v151_v47, 8.507059e+37 }
 0x2e7   :  { %v650_v41 = vpop.eup %649 }
 0x2e8   :  { %v143_v42 = vmul.f32 %v650_v41, %v141_v40  ;;  %vm148_vm6 = vweird.f32 %v650_v41 }
 0x2e9   :  { %vm149_vm8 = vmor %vm147_vm7, %vm148_vm6 }
 0x2ea   :  { %v144_v43 = vsub.f32 1.0, %v143_v42 }
 0x2ec   :  { %v145_v44 = vmul.f32 %v650_v41, %v144_v43 }
 0x2ee   :  { %v146_v45 = vadd.f32 %v650_v41, %v145_v44 }
 0x2f0   :  { %v150_v48 = vsel %vm149_vm8, %v650_v41, %v146_v45 }
 0x2f1   :  { %v155_v51 = vsel %vm152_vm9, %v154_v49, %v150_v48  ;;  %v614_v48 = vld [vmem:[%s853_s0 + $0x8] sm:$0x3] }
 0x2f2   :  { %v158_v53 = vmul.f32 %v155_v51, %v100_v29 }
 0x337   :  { %v161_v50 = vpop.permute.xlu2 %160 }
 0x338   :  { %v163_v52 = vmul.f32 %v161_v50, %v155_v51 }
 0x33a   :  { %165 = vrot.lane.b32.xlu0 %v163_v52, %s732_s18 }
 0x3ac   :  { %v166_v54 = vpop.permute.xlu0 %165 }
 0x3ad   :  { %v168_v55 = vadd.f32 %v166_v54, %v158_v53 }
 0x3af   :  { %651 = vtanh.f32 %v168_v55 }
 0x3b5   :  { %v652_v56 = vpop.eup %651 }
 0x3b6   :  { %171 = vrot.lane.b32.xlu1 %v652_v56, %s731_s17 }
 0x428   :  { %v172_v57 = vpop.permute.xlu1 %171 }
 0x429   :  { %v174_v58 = vmul.f32 %v172_v57, %v155_v51 }
 0x42b   :  { %176 = vrot.lane.b32.xlu2 %v174_v58, %s732_s18 }
 0x485   :  { %v177_v59 = vpop.permute.xlu2 %176 }
 0x486   :  { %605 = vst.msk [vmem:[%s855_s2 + $0x2] sm:$0x3] %vm31_vm0, %v177_v59  ;;  %607 = vmatmul.msk.f32.vlgmr.msra.gmra.mxu2 %vm41_vm1, %v177_v59 }
 0x509   :  { %v202_v61 = vpop.f32.mrf.mxu2 }
 0x50a   :  { %v205_v62 = vadd.f32 %v606_v60, %v202_v61 }
 0x50c   :  { %653 = vtanh.f32 %v205_v62  ;;  %v608_v0 = vmul.f32 -1.442695, %v205_v62 }
 0x50e   :  { %655 = vpow2.f32 %v608_v0 }
 0x512   :  { %v654_v63 = vpop.eup %653 }
 0x513   :  { %228 = vrot.lane.b32.xlu0 %v654_v63, %s731_s17 }
 0x514   :  { %v656_v1 = vpop.eup %655 }
 0x515   :  { %v209_v2 = vadd.f32 1.0, %v656_v1 }
 0x517   :  { %657 = vrcp.f32 %v209_v2  ;;  %v221_v8 = vand.u32 2147483648, %v209_v2  ;;  %vm215_vm11 = vweird.f32 %v209_v2  ;;  %v219_v9 = vand.u32 2147483647, %v209_v2 }
 0x519   :  { %v222_v11 = vor.u32 1.1754944e-38, %v221_v8  ;;  %vm220_vm13 = vcmp.eq.f32.partialorder %v219_v9, 8.507059e+37 }
 0x51d   :  { %v658_v3 = vpop.eup %657 }
 0x51e   :  { %v211_v4 = vmul.f32 %v658_v3, %v209_v2  ;;  %vm216_vm10 = vweird.f32 %v658_v3 }
 0x51f   :  { %vm217_vm12 = vmor %vm215_vm11, %vm216_vm10 }
 0x520   :  { %v212_v5 = vsub.f32 1.0, %v211_v4 }
 0x522   :  { %v213_v6 = vmul.f32 %v658_v3, %v212_v5 }
 0x524   :  { %v214_v7 = vadd.f32 %v658_v3, %v213_v6 }
 0x526   :  { %v218_v10 = vsel %vm217_vm12, %v658_v3, %v214_v7 }
 0x527   :  { %v223_v13 = vsel %vm220_vm13, %v222_v11, %v218_v10  ;;  %v618_v10 = vld [vmem:[%s853_s0 + $0xa] sm:$0x3] }
 0x528   :  { %v226_v15 = vmul.f32 %v223_v13, %v168_v55 }
 0x585   :  { %v229_v12 = vpop.permute.xlu0 %228 }
 0x586   :  { %v231_v14 = vmul.f32 %v229_v12, %v223_v13 }
 0x588   :  { %233 = vrot.lane.b32.xlu1 %v231_v14, %s732_s18 }
 0x5fa   :  { %v234_v16 = vpop.permute.xlu1 %233 }
 0x5fb   :  { %v236_v17 = vadd.f32 %v234_v16, %v226_v15 }
 0x5fd   :  { %659 = vtanh.f32 %v236_v17 }
 0x603   :  { %v660_v18 = vpop.eup %659 }
 0x604   :  { %239 = vrot.lane.b32.xlu2 %v660_v18, %s731_s17 }
 0x65e   :  { %v240_v19 = vpop.permute.xlu2 %239 }
 0x65f   :  { %v242_v20 = vmul.f32 %v240_v19, %v223_v13 }
 0x661   :  { %244 = vrot.lane.b32.xlu0 %v242_v20, %s732_s18 }
 0x6d3   :  { %v245_v21 = vpop.permute.xlu0 %244 }
 0x6d4   :  { %609 = vst.msk [vmem:[%s855_s2 + $0x4] sm:$0x3] %vm31_vm0, %v245_v21  ;;  %611 = vmatmul.msk.f32.vlgmr.msra.gmra.mxu3 %vm41_vm1, %v245_v21 }
 0x757   :  { %v270_v23 = vpop.f32.mrf.mxu3 }
 0x758   :  { %v273_v24 = vadd.f32 %v610_v22, %v270_v23 }
 0x75a   :  { %661 = vtanh.f32 %v273_v24  ;;  %v612_v26 = vmul.f32 -1.442695, %v273_v24 }
 0x75c   :  { %663 = vpow2.f32 %v612_v26 }
 0x760   :  { %v662_v25 = vpop.eup %661 }
 0x761   :  { %296 = vrot.lane.b32.xlu1 %v662_v25, %s731_s17 }
 0x762   :  { %v664_v27 = vpop.eup %663 }
 0x763   :  { %v277_v28 = vadd.f32 1.0, %v664_v27 }
 0x765   :  { %665 = vrcp.f32 %v277_v28  ;;  %v289_v34 = vand.u32 2147483648, %v277_v28  ;;  %vm283_vm15 = vweird.f32 %v277_v28  ;;  %v287_v35 = vand.u32 2147483647, %v277_v28 }
 0x767   :  { %v290_v37 = vor.u32 1.1754944e-38, %v289_v34  ;;  %vm288_vm3 = vcmp.eq.f32.partialorder %v287_v35, 8.507059e+37 }
 0x76b   :  { %v666_v29 = vpop.eup %665 }
 0x76c   :  { %v279_v30 = vmul.f32 %v666_v29, %v277_v28  ;;  %vm284_vm14 = vweird.f32 %v666_v29 }
 0x76d   :  { %vm285_vm2 = vmor %vm283_vm15, %vm284_vm14 }
 0x76e   :  { %v280_v31 = vsub.f32 1.0, %v279_v30 }
 0x770   :  { %v281_v32 = vmul.f32 %v666_v29, %v280_v31 }
 0x772   :  { %v282_v33 = vadd.f32 %v666_v29, %v281_v32 }
 0x774   :  { %v286_v36 = vsel %vm285_vm2, %v666_v29, %v282_v33 }
 0x775   :  { %v291_v39 = vsel %vm288_vm3, %v290_v37, %v286_v36  ;;  %v622_v36 = vld [vmem:[%s853_s0 + $0xc] sm:$0x3] }
 0x776   :  { %v294_v41 = vmul.f32 %v291_v39, %v236_v17 }
 0x7d3   :  { %v297_v38 = vpop.permute.xlu1 %296 }
 0x7d4   :  { %v299_v40 = vmul.f32 %v297_v38, %v291_v39 }
 0x7d6   :  { %301 = vrot.lane.b32.xlu2 %v299_v40, %s732_s18 }
 0x830   :  { %v302_v42 = vpop.permute.xlu2 %301 }
 0x831   :  { %v304_v43 = vadd.f32 %v302_v42, %v294_v41 }
 0x833   :  { %667 = vtanh.f32 %v304_v43 }
 0x839   :  { %v668_v44 = vpop.eup %667 }
 0x83a   :  { %307 = vrot.lane.b32.xlu0 %v668_v44, %s731_s17 }
 0x8ac   :  { %v308_v45 = vpop.permute.xlu0 %307 }
 0x8ad   :  { %v310_v46 = vmul.f32 %v308_v45, %v291_v39 }
 0x8af   :  { %312 = vrot.lane.b32.xlu1 %v310_v46, %s732_s18 }
 0x921   :  { %v313_v47 = vpop.permute.xlu1 %312 }
 0x922   :  { %613 = vst.msk [vmem:[%s855_s2 + $0x6] sm:$0x3] %vm31_vm0, %v313_v47  ;;  %615 = vmatmul.msk.f32.vlgmr.msrb.gmra.mxu0 %vm41_vm1, %v313_v47 }
 0x99f   :  { %v338_v49 = vpop.f32.mrf.mxu0 }
 0x9a0   :  { %v341_v50 = vadd.f32 %v614_v48, %v338_v49 }
 0x9a2   :  { %669 = vtanh.f32 %v341_v50  ;;  %v616_v52 = vmul.f32 -1.442695, %v341_v50 }
 0x9a4   :  { %671 = vpow2.f32 %v616_v52 }
 0x9a8   :  { %v670_v51 = vpop.eup %669 }
 0x9a9   :  { %364 = vrot.lane.b32.xlu2 %v670_v51, %s731_s17 }
 0x9aa   :  { %v672_v53 = vpop.eup %671 }
 0x9ab   :  { %v345_v54 = vadd.f32 1.0, %v672_v53 }
 0x9ad   :  { %673 = vrcp.f32 %v345_v54  ;;  %v357_v60 = vand.u32 2147483648, %v345_v54  ;;  %vm351_vm5 = vweird.f32 %v345_v54  ;;  %v355_v61 = vand.u32 2147483647, %v345_v54 }
 0x9af   :  { %v358_v63 = vor.u32 1.1754944e-38, %v357_v60  ;;  %vm356_vm7 = vcmp.eq.f32.partialorder %v355_v61, 8.507059e+37 }
 0x9b3   :  { %v674_v55 = vpop.eup %673 }
 0x9b4   :  { %v347_v56 = vmul.f32 %v674_v55, %v345_v54  ;;  %vm352_vm4 = vweird.f32 %v674_v55 }
 0x9b5   :  { %vm353_vm6 = vmor %vm351_vm5, %vm352_vm4 }
 0x9b6   :  { %v348_v57 = vsub.f32 1.0, %v347_v56 }
 0x9b8   :  { %v349_v58 = vmul.f32 %v674_v55, %v348_v57 }
 0x9ba   :  { %v350_v59 = vadd.f32 %v674_v55, %v349_v58 }
 0x9bc   :  { %v354_v62 = vsel %vm353_vm6, %v674_v55, %v350_v59 }
 0x9bd   :  { %v359_v1 = vsel %vm356_vm7, %v358_v63, %v354_v62  ;;  %v626_v62 = vld [vmem:[%s853_s0 + $0xe] sm:$0x3]  ;;  %s733_s0 = smov 96  }
 0x9be   :  { %v362_v3 = vmul.f32 %v359_v1, %v304_v43 }
 0xa03   :  { %v365_v0 = vpop.permute.xlu2 %364 }
 0xa04   :  { %v367_v2 = vmul.f32 %v365_v0, %v359_v1 }
 0xa06   :  { %369 = vrot.lane.b32.xlu0 %v367_v2, %s732_s18 }
 0xa78   :  { %v370_v4 = vpop.permute.xlu0 %369 }
 0xa79   :  { %v372_v5 = vadd.f32 %v370_v4, %v362_v3 }
 0xa7b   :  { %675 = vtanh.f32 %v372_v5 }
 0xa81   :  { %v676_v6 = vpop.eup %675 }
 0xa82   :  { %375 = vrot.lane.b32.xlu1 %v676_v6, %s731_s17 }
 0xaf4   :  { %v376_v7 = vpop.permute.xlu1 %375 }
 0xaf5   :  { %v378_v8 = vmul.f32 %v376_v7, %v359_v1 }
 0xaf7   :  { %380 = vrot.lane.b32.xlu2 %v378_v8, %s732_s18 }
 0xb51   :  { %v381_v9 = vpop.permute.xlu2 %380 }
 0xb52   :  { %617 = vst.msk [vmem:[%s855_s2 + $0x8] sm:$0x3] %vm31_vm0, %v381_v9  ;;  %619 = vmatmul.msk.f32.vlgmr.msrb.gmra.mxu1 %vm41_vm1, %v381_v9 }
 0xbcf   :  { %v406_v11 = vpop.f32.mrf.mxu1 }
 0xbd0   :  { %v409_v12 = vadd.f32 %v618_v10, %v406_v11 }
 0xbd2   :  { %677 = vtanh.f32 %v409_v12  ;;  %v620_v14 = vmul.f32 -1.442695, %v409_v12 }
 0xbd4   :  { %679 = vpow2.f32 %v620_v14 }
 0xbd8   :  { %v678_v13 = vpop.eup %677 }
 0xbd9   :  { %432 = vrot.lane.b32.xlu0 %v678_v13, %s731_s17 }
 0xbda   :  { %v680_v15 = vpop.eup %679 }
 0xbdb   :  { %v413_v16 = vadd.f32 1.0, %v680_v15 }
 0xbdd   :  { %681 = vrcp.f32 %v413_v16  ;;  %v425_v22 = vand.u32 2147483648, %v413_v16  ;;  %vm419_vm9 = vweird.f32 %v413_v16  ;;  %v423_v23 = vand.u32 2147483647, %v413_v16 }
 0xbdf   :  { %v426_v25 = vor.u32 1.1754944e-38, %v425_v22  ;;  %vm424_vm11 = vcmp.eq.f32.partialorder %v423_v23, 8.507059e+37 }
 0xbe3   :  { %v682_v17 = vpop.eup %681 }
 0xbe4   :  { %v415_v18 = vmul.f32 %v682_v17, %v413_v16  ;;  %vm420_vm8 = vweird.f32 %v682_v17 }
 0xbe5   :  { %vm421_vm10 = vmor %vm419_vm9, %vm420_vm8 }
 0xbe6   :  { %v416_v19 = vsub.f32 1.0, %v415_v18 }
 0xbe8   :  { %v417_v20 = vmul.f32 %v682_v17, %v416_v19 }
 0xbea   :  { %v418_v21 = vadd.f32 %v682_v17, %v417_v20 }
 0xbec   :  { %v422_v24 = vsel %vm421_vm10, %v682_v17, %v418_v21 }
 0xbed   :  { %v427_v27 = vsel %vm424_vm11, %v426_v25, %v422_v24 }
 0xbee   :  { %v430_v29 = vmul.f32 %v427_v27, %v372_v5 }
 0xc4b   :  { %v433_v26 = vpop.permute.xlu0 %432 }
 0xc4c   :  { %v435_v28 = vmul.f32 %v433_v26, %v427_v27 }
 0xc4e   :  { %437 = vrot.lane.b32.xlu1 %v435_v28, %s732_s18 }
 0xcc0   :  { %v438_v30 = vpop.permute.xlu1 %437 }
 0xcc1   :  { %v440_v31 = vadd.f32 %v438_v30, %v430_v29 }
 0xcc3   :  { %683 = vtanh.f32 %v440_v31 }
 0xcc9   :  { %v684_v32 = vpop.eup %683 }
 0xcca   :  { %443 = vrot.lane.b32.xlu2 %v684_v32, %s731_s17 }
 0xd24   :  { %v444_v33 = vpop.permute.xlu2 %443 }
 0xd25   :  { %v446_v34 = vmul.f32 %v444_v33, %v427_v27 }
 0xd27   :  { %448 = vrot.lane.b32.xlu0 %v446_v34, %s732_s18 }
 0xd99   :  { %v449_v35 = vpop.permute.xlu0 %448 }
 0xd9a   :  { %621 = vst.msk [vmem:[%s855_s2 + $0xa] sm:$0x3] %vm31_vm0, %v449_v35  ;;  %623 = vmatmul.msk.f32.vlgmr.msrb.gmra.mxu2 %vm41_vm1, %v449_v35 }
 0xe1d   :  { %v474_v37 = vpop.f32.mrf.mxu2 }
 0xe1e   :  { %v477_v38 = vadd.f32 %v622_v36, %v474_v37 }
 0xe20   :  { %685 = vtanh.f32 %v477_v38  ;;  %v624_v40 = vmul.f32 -1.442695, %v477_v38 }
 0xe22   :  { %687 = vpow2.f32 %v624_v40 }
 0xe26   :  { %v686_v39 = vpop.eup %685 }
 0xe27   :  { %500 = vrot.lane.b32.xlu1 %v686_v39, %s731_s17 }
 0xe28   :  { %v688_v41 = vpop.eup %687 }
 0xe29   :  { %v481_v42 = vadd.f32 1.0, %v688_v41 }
 0xe2b   :  { %689 = vrcp.f32 %v481_v42  ;;  %v493_v48 = vand.u32 2147483648, %v481_v42  ;;  %vm487_vm13 = vweird.f32 %v481_v42  ;;  %v491_v49 = vand.u32 2147483647, %v481_v42 }
 0xe2d   :  { %v494_v51 = vor.u32 1.1754944e-38, %v493_v48  ;;  %vm492_vm15 = vcmp.eq.f32.partialorder %v491_v49, 8.507059e+37 }
 0xe31   :  { %v690_v43 = vpop.eup %689 }
 0xe32   :  { %v483_v44 = vmul.f32 %v690_v43, %v481_v42  ;;  %vm488_vm12 = vweird.f32 %v690_v43 }
 0xe33   :  { %vm489_vm14 = vmor %vm487_vm13, %vm488_vm12 }
 0xe34   :  { %v484_v45 = vsub.f32 1.0, %v483_v44 }
 0xe36   :  { %v485_v46 = vmul.f32 %v690_v43, %v484_v45 }
 0xe38   :  { %v486_v47 = vadd.f32 %v690_v43, %v485_v46 }
 0xe3a   :  { %v490_v50 = vsel %vm489_vm14, %v690_v43, %v486_v47 }
 0xe3b   :  { %v495_v53 = vsel %vm492_vm15, %v494_v51, %v490_v50 }
 0xe3c   :  { %v498_v55 = vmul.f32 %v495_v53, %v440_v31 }
 0xe99   :  { %v501_v52 = vpop.permute.xlu1 %500 }
 0xe9a   :  { %v503_v54 = vmul.f32 %v501_v52, %v495_v53 }
 0xe9c   :  { %505 = vrot.lane.b32.xlu2 %v503_v54, %s732_s18 }
 0xef6   :  { %v506_v56 = vpop.permute.xlu2 %505 }
 0xef7   :  { %v508_v57 = vadd.f32 %v506_v56, %v498_v55 }
 0xef9   :  { %691 = vtanh.f32 %v508_v57 }
 0xeff   :  { %v692_v58 = vpop.eup %691 }
 0xf00   :  { %511 = vrot.lane.b32.xlu0 %v692_v58, %s731_s17 }
 0xf72   :  { %v512_v59 = vpop.permute.xlu0 %511 }
 0xf73   :  { %v514_v60 = vmul.f32 %v512_v59, %v495_v53 }
 0xf75   :  { %516 = vrot.lane.b32.xlu1 %v514_v60, %s732_s18 }
 0xfe7   :  { %v517_v61 = vpop.permute.xlu1 %516 }
 0xfe8   :  { %625 = vst.msk [vmem:[%s855_s2 + $0xc] sm:$0x3] %vm31_vm0, %v517_v61  ;;  %627 = vmatmul.msk.f32.vlgmr.msrb.gmra.mxu3 %vm41_vm1, %v517_v61 }
0x106b   :  { %v542_v63 = vpop.f32.mrf.mxu3 }
0x106c   :  { %v545_v0 = vadd.f32 %v626_v62, %v542_v63 }
0x106e   :  { %693 = vtanh.f32 %v545_v0  ;;  %v628_v2 = vmul.f32 -1.442695, %v545_v0 }
0x1070   :  { %695 = vpow2.f32 %v628_v2 }
0x1074   :  { %v694_v1 = vpop.eup %693 }
0x1075   :  { %568 = vrot.lane.b32.xlu2 %v694_v1, %s731_s17 }
0x1076   :  { %v696_v3 = vpop.eup %695 }
0x1077   :  { %v549_v4 = vadd.f32 1.0, %v696_v3 }
0x1079   :  { %697 = vrcp.f32 %v549_v4  ;;  %v561_v10 = vand.u32 2147483648, %v549_v4  ;;  %vm555_vm2 = vweird.f32 %v549_v4  ;;  %v559_v11 = vand.u32 2147483647, %v549_v4 }
0x107b   :  { %v562_v13 = vor.u32 1.1754944e-38, %v561_v10  ;;  %vm560_vm4 = vcmp.eq.f32.partialorder %v559_v11, 8.507059e+37 }
0x107f   :  { %v698_v5 = vpop.eup %697 }
0x1080   :  { %v551_v6 = vmul.f32 %v698_v5, %v549_v4  ;;  %vm556_vm1 = vweird.f32 %v698_v5 }
0x1081   :  { %vm557_vm3 = vmor %vm555_vm2, %vm556_vm1 }
0x1082   :  { %v552_v7 = vsub.f32 1.0, %v551_v6 }
0x1084   :  { %v553_v8 = vmul.f32 %v698_v5, %v552_v7 }
0x1086   :  { %v554_v9 = vadd.f32 %v698_v5, %v553_v8 }
0x1088   :  { %v558_v12 = vsel %vm557_vm3, %v698_v5, %v554_v9 }
0x1089   :  { %v563_v15 = vsel %vm560_vm4, %v562_v13, %v558_v12 }
0x108a   :  { %v566_v17 = vmul.f32 %v563_v15, %v508_v57 }
0x10cf   :  { %v569_v14 = vpop.permute.xlu2 %568 }
0x10d0   :  { %v571_v16 = vmul.f32 %v569_v14, %v563_v15 }
0x10d2   :  { %573 = vrot.lane.b32.xlu0 %v571_v16, %s732_s18 }
0x1144   :  { %v574_v18 = vpop.permute.xlu0 %573 }
0x1145   :  { %v576_v19 = vadd.f32 %v574_v18, %v566_v17 }
0x1147   :  { %699 = vtanh.f32 %v576_v19  ;;  %591 = vrot.lane.b32.xlu0 %v576_v19, %s733_s0 }
0x114d   :  { %v700_v20 = vpop.eup %699 }
0x114e   :  { %579 = vrot.lane.b32.xlu1 %v700_v20, %s731_s17 }
0x11b9   :  { %v592_v21 = vpop.permute.xlu0 %591 }
0x11ba   :  { %594 = vst.msk [vmem:[#allocation3] sm:$0x3] %vm31_vm0, %v592_v21 }
0x11c0   :  { %v580_v22 = vpop.permute.xlu1 %579 }
0x11c1   :  { %v582_v23 = vmul.f32 %v580_v22, %v563_v15 }
0x11c3   :  { %584 = vrot.lane.b32.xlu2 %v582_v23, %s732_s18 }
0x121d   :  { %v585_v24 = vpop.permute.xlu2 %584 }
0x121e   :  { %629 = vst.msk [vmem:[%s855_s2 + $0xe] sm:$0x3] %vm31_vm0, %v585_v24 }
0x121f   :  { %589 = vst.msk [vmem:[#allocation2] sm:$0x3] %vm31_vm0, %v585_v24 }
0x1220   :  { %599 = vsyncpa [#allocation5], 1 }

</bundles_post_ra>
